<compile_context>
chip_gen: v7x
topology: tpu7x:2x2x1
jax: 0.10.0
libtpu: 0.0.40
codegen_flags: <defaults>
</compile_context>

<pallas_src>
import math

import jax
import jax.numpy as jnp
from jax.experimental import pallas as pl
from jax.experimental.pallas import tpu as pltpu

EMBED = 32
HEADS = 4
HEAD_DIM = EMBED // HEADS
EXPANSION = 2
EPS = 1e-5                            # torch nn.LayerNorm default eps
NEG_INF = -1e20                       # torch masked_fill value
INV_SCALE = 1.0 / math.sqrt(EMBED)    # torch divides scores by sqrt(embed_dim)


# ----------------------------------------------------------------------------
# In-kernel helpers.
# ----------------------------------------------------------------------------
def _layernorm(x, gamma, beta):
    mu = jnp.mean(x, axis=-1, keepdims=True)
    var = jnp.mean((x - mu) ** 2, axis=-1, keepdims=True)     # biased var (torch)
    return (x - mu) * jax.lax.rsqrt(var + EPS) * gamma + beta


def _linear(x, lin_ref):
    """lin_ref packs [W (in,out); b (1,out)] as one (in+1, out) slab."""
    in_dim = lin_ref.shape[0] - 1
    w = lin_ref[0:in_dim, :]
    b = lin_ref[in_dim:in_dim + 1, :]
    return jnp.dot(x, w, preferred_element_type=jnp.float32) + b


def _mha_wide(q, k, v, bias_wide, head_mask, block_ones):
    """All-head attention with batch folded into rows and no per-head loop.

    q: (Mq, E); k, v: (Mk, E).
    head_mask:  (H*Mk, E)    row block h keeps only head-h lanes.
    bias_wide:  (Mq, H*Mk)   additive 0 / -1e20 (torch mask + cross-batch block).
    block_ones: (H*Mk, H*Mk) kron(I_H, ones(Mk,Mk)) -> per-head softmax sums.
    """
    k_wide = jnp.tile(k, (HEADS, 1)) * head_mask             # (H*Mk, E)
    v_wide = jnp.tile(v, (HEADS, 1)) * head_mask             # (H*Mk, E)
    # scores[i, h*Mk + j] = <q_h[i], k_h[j]> : zeroed lanes drop other heads.
    s = jnp.dot(q, k_wide.T, preferred_element_type=jnp.float32)
    s = (s + bias_wide) * INV_SCALE                           # mask before scale (torch)
    m = jnp.max(s, axis=-1, keepdims=True)                    # shared max: shift-invariant
    e = jnp.exp(s - m)
    denom = jnp.dot(e, block_ones, preferred_element_type=jnp.float32)
    a = e * pl.reciprocal(denom, approx=True)                 # per-head softmax (EUP slot)
    # out[i, h*D + d] = sum_j a_h[i, j] * v_h[j, d]  -> head-concatenated layout.
    return jnp.dot(a, v_wide, preferred_element_type=jnp.float32)


# ----------------------------------------------------------------------------
# Kernel: single invocation, everything resident in VMEM.
# ----------------------------------------------------------------------------
def decoder_kernel(x_ref, key_ref, val_ref,
                   bias1_ref, bias2_ref, hm1_ref, hm2_ref, blk1_ref, blk2_ref,
                   qkv1_ref, o1_ref, q2_ref, kv2_ref, o2_ref, f1_ref, f2_ref,
                   ln_ref, o_ref):
    E = EMBED
    x = x_ref[...]                                            # (B*Sq, E)

    # ---- masked self-attention over the decoder input --------------------
    qkv = _linear(x, qkv1_ref)                                # fused QKV, (B*Sq, 3E)
    attn1 = _mha_wide(qkv[:, 0:E], qkv[:, E:2 * E], qkv[:, 2 * E:3 * E],
                      bias1_ref[...], hm1_ref[...], blk1_ref[...])
    attn1 = _linear(attn1, o1_ref)
    query = _layernorm(attn1 + x, ln_ref[0:1, :], ln_ref[1:2, :])

    # ---- cross attention (Q from decoder, K/V from encoder) --------------
    q2 = _linear(query, q2_ref)                               # (B*Sq, E)
    kv_src = jnp.concatenate([key_ref[...], val_ref[...]], axis=0)   # (2*Mk, E)
    kv = _linear(kv_src, kv2_ref)                             # fused K/V, (2*Mk, 2E)
    mk = key_ref.shape[0]
    k2 = kv[0:mk, 0:E]                                        # key rows   through Wk
    v2 = kv[mk:2 * mk, E:2 * E]                               # value rows through Wv
    attn2 = _mha_wide(q2, k2, v2, bias2_ref[...], hm2_ref[...], blk2_ref[...])
    attn2 = _linear(attn2, o2_ref)
    x2 = _layernorm(attn2 + query, ln_ref[2:3, :], ln_ref[3:4, :])

    # ---- position-wise feed forward ---------------------------------------
    h = jnp.maximum(_linear(x2, f1_ref), 0.0)                 # ReLU
    ff = _linear(h, f2_ref)
    # TODO(synk): the store stays (B*Sq, 32)-wide (<128 lanes); a lane-dense
    # (B, Sq*E) slab would need a minor-dim reshape whose relayout cost is not
    # worth it at these tiny sizes.
    o_ref[...] = _layernorm(x2 + ff, ln_ref[4:5, :], ln_ref[5:6, :])


# ----------------------------------------------------------------------------
# Wrapper: flatten batch, build additive biases / head masks, pack params.
# ----------------------------------------------------------------------------
def _pack_linear(w, b):
    return jnp.concatenate([w, b], axis=0)                    # (in+1, out)


@jax.jit
def decoder_block(x, value, key, in_mask, out_mask, params):
    """x:(B,Sq,E), value/key:(B,Skv,E), in_mask:(B,1,Sq,Skv), out_mask:(B,1,Sq,Sq)."""
    B, Sq, E = x.shape
    Skv = key.shape[1]
    Mq, Mk = B * Sq, B * Skv

    x_flat = x.reshape(Mq, E)
    key_flat = key.reshape(Mk, E)
    val_flat = value.reshape(Mk, E)

    # Additive attention bias: 0 where attending is allowed, -1e20 where the
    # torch mask is 0 OR where query/key rows belong to different batch
    # elements (the latter makes batch folding exact).  Tiled across heads to
    # match the (Mq, H*Mk) wide score layout used in the kernel.
    def bias_wide(mask, sk):
        m = mask.reshape(B, -1, sk)                           # (B, Sq, Sk)
        sq = m.shape[1]
        rb = jnp.arange(B * sq) // sq                         # query row -> batch
        rs = jnp.arange(B * sq) % sq                          # query row -> position
        cb = jnp.arange(B * sk) // sk                         # key col  -> batch
        cs = jnp.arange(B * sk) % sk                          # key col  -> position
        same = rb[:, None] == cb[None, :]
        keep = m[rb[:, None], rs[:, None], cs[None, :]] != 0
        bias = jnp.where(same & keep, 0.0, NEG_INF).astype(jnp.float32)
        return jnp.tile(bias, (1, HEADS))                     # (B*Sq, H*B*Sk)

    def head_mask(mk):          # (H*mk, E): row block h keeps only head-h lanes
        row_head = jnp.repeat(jnp.arange(HEADS), mk)
        lane_head = jnp.arange(E) // HEAD_DIM
        return (row_head[:, None] == lane_head[None, :]).astype(jnp.float32)

    def block_ones(mk):         # kron(I_H, ones(mk, mk))
        return jnp.kron(jnp.eye(HEADS, dtype=jnp.float32),
                        jnp.ones((mk, mk), jnp.float32))

    p = params
    lin_qkv1 = _pack_linear(
        jnp.concatenate([p["wq1"], p["wk1"], p["wv1"]], axis=1),
        jnp.concatenate([p["bq1"], p["bk1"], p["bv1"]], axis=1))
    lin_kv2 = _pack_linear(
        jnp.concatenate([p["wk2"], p["wv2"]], axis=1),
        jnp.concatenate([p["bk2"], p["bv2"]], axis=1))
    lin_o1 = _pack_linear(p["wo1"], p["bo1"])
    lin_q2 = _pack_linear(p["wq2"], p["bq2"])
    lin_o2 = _pack_linear(p["wo2"], p["bo2"])
    lin_f1 = _pack_linear(p["wf1"], p["bf1"])
    lin_f2 = _pack_linear(p["wf2"], p["bf2"])
    ln_pack = jnp.concatenate([p["gn"], p["bn"], p["g1"], p["b1"],
                               p["g2"], p["b2"]], axis=0)     # (6, E)

    inputs = (x_flat, key_flat, val_flat,
              bias_wide(out_mask, Sq), bias_wide(in_mask, Skv),
              head_mask(Mq), head_mask(Mk),
              block_ones(Mq), block_ones(Mk),
              lin_qkv1, lin_o1, lin_q2, lin_kv2, lin_o2, lin_f1, lin_f2, ln_pack)

    vmem = pl.BlockSpec(memory_space=pltpu.MemorySpace.VMEM)
    out_flat = pl.pallas_call(
        decoder_kernel,
        out_shape=jax.ShapeDtypeStruct((Mq, E), jnp.float32),
        in_specs=[vmem] * len(inputs),
        out_specs=vmem,
    )(*inputs)
    return out_flat.reshape(B, Sq, E)


# ----------------------------------------------------------------------------
# Deterministic synthetic parameters (shapes from the nn.Module __init__).
# ----------------------------------------------------------------------------
def init_params(rng):
    keys = iter(jax.random.split(rng, 32))

    def w(shape):
        return jax.random.normal(next(keys), shape, jnp.float32) * 0.05

    p = {}
    for n in ["wq1", "wk1", "wv1", "wo1", "wq2", "wk2", "wv2", "wo2"]:
        p[n] = w((EMBED, EMBED))                    # stored (in, out)
    for n in ["bq1", "bk1", "bv1", "bo1", "bq2", "bk2", "bv2", "bo2"]:
        p[n] = w((1, EMBED))
    for n in ["gn", "g1", "g2"]:
        p[n] = jnp.ones((1, EMBED), jnp.float32)    # LayerNorm weight
    for n in ["bn", "b1", "b2"]:
        p[n] = jnp.zeros((1, EMBED), jnp.float32)   # LayerNorm bias
    p["wf1"] = w((EMBED, EXPANSION * EMBED))
    p["bf1"] = w((1, EXPANSION * EMBED))
    p["wf2"] = w((EXPANSION * EMBED, EMBED))
    p["bf2"] = w((1, EMBED))
    return p


# ----------------------------------------------------------------------------
# Pure-JAX reference mirroring the PyTorch module (per-batch, per-head).
# ----------------------------------------------------------------------------
def _reference(x, value, key, in_mask, out_mask, p):
    def attention(q_in, k_in, v_in, mask, wq, bq, wk, bk, wv, bv, wo, bo):
        q = q_in @ wq + bq
        k = k_in @ wk + bk
        v = v_in @ wv + bv
        B, Sq, _ = q.shape
        Sk = k.shape[1]
        qh = q.reshape(B, Sq, HEADS, HEAD_DIM)
        kh = k.reshape(B, Sk, HEADS, HEAD_DIM)
        vh = v.reshape(B, Sk, HEADS, HEAD_DIM)
        s = jnp.einsum('nqhd,nkhd->nhqk', qh, kh)
        s = jnp.where(mask == 0, NEG_INF, s)
        a = jax.nn.softmax(s / math.sqrt(EMBED), axis=3)
        o = jnp.einsum('nhqk,nkhd->nqhd', a, vh).reshape(B, Sq, EMBED)
        return o @ wo + bo

    def ln(z, g, b):
        mu = z.mean(-1, keepdims=True)
        var = ((z - mu) ** 2).mean(-1, keepdims=True)
        return (z - mu) * jax.lax.rsqrt(var + EPS) * g + b

    attn1 = attention(x, x, x, out_mask,
                      p["wq1"], p["bq1"], p["wk1"], p["bk1"],
                      p["wv1"], p["bv1"], p["wo1"], p["bo1"])
    query = ln(attn1 + x, p["gn"], p["bn"])
    attn2 = attention(query, key, value, in_mask,
                      p["wq2"], p["bq2"], p["wk2"], p["bk2"],
                      p["wv2"], p["bv2"], p["wo2"], p["bo2"])
    x2 = ln(attn2 + query, p["g1"], p["b1"])
    ff = jnp.maximum(x2 @ p["wf1"] + p["bf1"], 0.0) @ p["wf2"] + p["bf2"]
    return ln(x2 + ff, p["g2"], p["b2"])


if __name__ == "__main__":
    B, Sq, Skv = 2, 8, 8
    rng = jax.random.PRNGKey(0)
    k1, k2, k3, kp = jax.random.split(rng, 4)
    x = jax.random.normal(k1, (B, Sq, EMBED), jnp.float32)
    value = jax.random.normal(k2, (B, Skv, EMBED), jnp.float32)
    key = jax.random.normal(k3, (B, Skv, EMBED), jnp.float32)
    # decoder self-attention mask: causal; encoder-decoder mask: all valid.
    out_mask = jnp.broadcast_to(jnp.tril(jnp.ones((Sq, Sq), jnp.float32)),
                                (B, 1, Sq, Sq))
    in_mask = jnp.ones((B, 1, Sq, Skv), jnp.float32)
    params = init_params(kp)

    out = decoder_block(x, value, key, in_mask, out_mask, params)
    out = jax.block_until_ready(out)

    ref = _reference(x, value, key, in_mask, out_mask, params)
    assert out.shape == (B, Sq, EMBED)
    assert bool(jnp.all(jnp.isfinite(out)))
    # tolerance accounts for the approximate EUP reciprocal in the softmax
    assert jnp.allclose(out, ref, atol=1e-2, rtol=1e-2), "mismatch vs JAX reference"

    print("KERNEL_OK")
</pallas_src>

<mosaic_0001>
module attributes {stable_mosaic.version = 11 : i64} {
  func.func @decoder_kernel(%arg0: memref<16x32xf32, #tpu.memory_space<vmem>>, %arg1: memref<16x32xf32, #tpu.memory_space<vmem>>, %arg2: memref<16x32xf32, #tpu.memory_space<vmem>>, %arg3: memref<16x64xf32, #tpu.memory_space<vmem>>, %arg4: memref<16x64xf32, #tpu.memory_space<vmem>>, %arg5: memref<64x32xf32, #tpu.memory_space<vmem>>, %arg6: memref<64x32xf32, #tpu.memory_space<vmem>>, %arg7: memref<64x64xf32, #tpu.memory_space<vmem>>, %arg8: memref<64x64xf32, #tpu.memory_space<vmem>>, %arg9: memref<33x96xf32, #tpu.memory_space<vmem>>, %arg10: memref<33x32xf32, #tpu.memory_space<vmem>>, %arg11: memref<33x32xf32, #tpu.memory_space<vmem>>, %arg12: memref<33x64xf32, #tpu.memory_space<vmem>>, %arg13: memref<33x32xf32, #tpu.memory_space<vmem>>, %arg14: memref<33x64xf32, #tpu.memory_space<vmem>>, %arg15: memref<65x32xf32, #tpu.memory_space<vmem>>, %arg16: memref<6x32xf32, #tpu.memory_space<vmem>>, %arg17: memref<16x32xf32, #tpu.memory_space<vmem>>) attributes {dimension_semantics = [], scalar_prefetch = 0 : i64, scratch_operands = 0 : i64, tpu.core_type = #tpu.core_type<tc>} {
    %c0 = arith.constant 0 : index
    %c0_0 = arith.constant 0 : index
    %0 = vector.load %arg0[%c0, %c0_0] : memref<16x32xf32, #tpu.memory_space<vmem>>, vector<16x32xf32>
    %c0_1 = arith.constant 0 : index
    %c0_2 = arith.constant 0 : index
    %1 = vector.load %arg9[%c0_1, %c0_2] : memref<33x96xf32, #tpu.memory_space<vmem>>, vector<32x96xf32>
    %c32 = arith.constant 32 : index
    %c0_3 = arith.constant 0 : index
    %2 = vector.load %arg9[%c32, %c0_3] : memref<33x96xf32, #tpu.memory_space<vmem>>, vector<1x96xf32>
    %cst = arith.constant dense<0.000000e+00> : vector<16x96xf32>
    %3 = tpu.matmul %0, %1, %cst {dimension_numbers = #tpu.dot_dimension_numbers<[1], [0], [0], [1], [0, 0, 1, 1], [], []>} : vector<16x32xf32>, vector<32x96xf32>, vector<16x96xf32> -> vector<16x96xf32>
    %4 = vector.broadcast %2 : vector<1x96xf32> to vector<16x96xf32>
    %5 = arith.addf %3, %4 : vector<16x96xf32>
    %6 = vector.extract_strided_slice %5 {offsets = [0, 0], sizes = [16, 32], strides = [1, 1]} : vector<16x96xf32> to vector<16x32xf32>
    %7 = vector.extract_strided_slice %5 {offsets = [0, 32], sizes = [16, 32], strides = [1, 1]} : vector<16x96xf32> to vector<16x32xf32>
    %8 = vector.extract_strided_slice %5 {offsets = [0, 64], sizes = [16, 32], strides = [1, 1]} : vector<16x96xf32> to vector<16x32xf32>
    %c0_4 = arith.constant 0 : index
    %c0_5 = arith.constant 0 : index
    %9 = vector.load %arg3[%c0_4, %c0_5] : memref<16x64xf32, #tpu.memory_space<vmem>>, vector<16x64xf32>
    %c0_6 = arith.constant 0 : index
    %c0_7 = arith.constant 0 : index
    %10 = vector.load %arg5[%c0_6, %c0_7] : memref<64x32xf32, #tpu.memory_space<vmem>>, vector<64x32xf32>
    %c0_8 = arith.constant 0 : index
    %c0_9 = arith.constant 0 : index
    %11 = vector.load %arg7[%c0_8, %c0_9] : memref<64x64xf32, #tpu.memory_space<vmem>>, vector<64x64xf32>
    %12 = tpu.concatenate %7, %7, %7, %7 in 0 : vector<16x32xf32>, vector<16x32xf32>, vector<16x32xf32>, vector<16x32xf32> -> vector<64x32xf32>
    %13 = arith.mulf %12, %10 : vector<64x32xf32>
    %14 = tpu.concatenate %8, %8, %8, %8 in 0 : vector<16x32xf32>, vector<16x32xf32>, vector<16x32xf32>, vector<16x32xf32> -> vector<64x32xf32>
    %15 = arith.mulf %14, %10 : vector<64x32xf32>
    %16 = tpu.transpose %13, [1, 0] : vector<64x32xf32> -> vector<32x64xf32>
    %cst_10 = arith.constant dense<0.000000e+00> : vector<16x64xf32>
    %17 = tpu.matmul %6, %16, %cst_10 {dimension_numbers = #tpu.dot_dimension_numbers<[1], [0], [0], [1], [0, 0, 1, 1], [], []>} : vector<16x32xf32>, vector<32x64xf32>, vector<16x64xf32> -> vector<16x64xf32>
    %18 = arith.addf %17, %9 : vector<16x64xf32>
    %cst_11 = arith.constant 0.176776692 : f32
    %19 = vector.broadcast %cst_11 : f32 to vector<16x64xf32>
    %20 = arith.mulf %18, %19 : vector<16x64xf32>
    %cst_12 = arith.constant dense<0xFF800000> : vector<16xf32>
    %21 = vector.multi_reduction <maximumf>, %20, %cst_12 [1] : vector<16x64xf32> to vector<16xf32>
    %22 = vector.shape_cast %21 : vector<16xf32> to vector<16x1xf32>
    %23 = vector.broadcast %22 : vector<16x1xf32> to vector<16x64xf32>
    %24 = arith.subf %20, %23 : vector<16x64xf32>
    %25 = math.exp %24 : vector<16x64xf32>
    %cst_13 = arith.constant dense<0.000000e+00> : vector<16x64xf32>
    %26 = tpu.matmul %25, %11, %cst_13 {dimension_numbers = #tpu.dot_dimension_numbers<[1], [0], [0], [1], [0, 0, 1, 1], [], []>} : vector<16x64xf32>, vector<64x64xf32>, vector<16x64xf32> -> vector<16x64xf32>
    %27 = tpu.reciprocal %26 {approx = true} : vector<16x64xf32> -> vector<16x64xf32>
    %28 = arith.mulf %25, %27 : vector<16x64xf32>
    %cst_14 = arith.constant dense<0.000000e+00> : vector<16x32xf32>
    %29 = tpu.matmul %28, %15, %cst_14 {dimension_numbers = #tpu.dot_dimension_numbers<[1], [0], [0], [1], [0, 0, 1, 1], [], []>} : vector<16x64xf32>, vector<64x32xf32>, vector<16x32xf32> -> vector<16x32xf32>
    %c0_15 = arith.constant 0 : index
    %c0_16 = arith.constant 0 : index
    %30 = vector.load %arg10[%c0_15, %c0_16] : memref<33x32xf32, #tpu.memory_space<vmem>>, vector<32x32xf32>
    %c32_17 = arith.constant 32 : index
    %c0_18 = arith.constant 0 : index
    %31 = vector.load %arg10[%c32_17, %c0_18] : memref<33x32xf32, #tpu.memory_space<vmem>>, vector<1x32xf32>
    %cst_19 = arith.constant dense<0.000000e+00> : vector<16x32xf32>
    %32 = tpu.matmul %29, %30, %cst_19 {dimension_numbers = #tpu.dot_dimension_numbers<[1], [0], [0], [1], [0, 0, 1, 1], [], []>} : vector<16x32xf32>, vector<32x32xf32>, vector<16x32xf32> -> vector<16x32xf32>
    %33 = vector.broadcast %31 : vector<1x32xf32> to vector<16x32xf32>
    %34 = arith.addf %32, %33 : vector<16x32xf32>
    %35 = arith.addf %34, %0 : vector<16x32xf32>
    %c0_20 = arith.constant 0 : index
    %c0_21 = arith.constant 0 : index
    %36 = vector.load %arg16[%c0_20, %c0_21] : memref<6x32xf32, #tpu.memory_space<vmem>>, vector<1x32xf32>
    %c1 = arith.constant 1 : index
    %c0_22 = arith.constant 0 : index
    %37 = vector.load %arg16[%c1, %c0_22] : memref<6x32xf32, #tpu.memory_space<vmem>>, vector<1x32xf32>
    %cst_23 = arith.constant dense<0.000000e+00> : vector<16xf32>
    %38 = vector.multi_reduction <add>, %35, %cst_23 [1] : vector<16x32xf32> to vector<16xf32>
    %39 = vector.shape_cast %38 : vector<16xf32> to vector<16x1xf32>
    %cst_24 = arith.constant 3.200000e+01 : f32
    %40 = vector.broadcast %cst_24 : f32 to vector<16x1xf32>
    %41 = arith.divf %39, %40 : vector<16x1xf32>
    %42 = vector.broadcast %41 : vector<16x1xf32> to vector<16x32xf32>
    %43 = arith.subf %35, %42 : vector<16x32xf32>
    %44 = arith.mulf %43, %43 : vector<16x32xf32>
    %cst_25 = arith.constant dense<0.000000e+00> : vector<16xf32>
    %45 = vector.multi_reduction <add>, %44, %cst_25 [1] : vector<16x32xf32> to vector<16xf32>
    %46 = vector.shape_cast %45 : vector<16xf32> to vector<16x1xf32>
    %cst_26 = arith.constant 3.200000e+01 : f32
    %47 = vector.broadcast %cst_26 : f32 to vector<16x1xf32>
    %48 = arith.divf %46, %47 : vector<16x1xf32>
    %49 = vector.broadcast %41 : vector<16x1xf32> to vector<16x32xf32>
    %50 = arith.subf %35, %49 : vector<16x32xf32>
    %cst_27 = arith.constant 9.99999974E-6 : f32
    %51 = vector.broadcast %cst_27 : f32 to vector<16x1xf32>
    %52 = arith.addf %48, %51 : vector<16x1xf32>
    %53 = math.rsqrt %52 : vector<16x1xf32>
    %54 = vector.broadcast %53 : vector<16x1xf32> to vector<16x32xf32>
    %55 = arith.mulf %50, %54 : vector<16x32xf32>
    %56 = vector.broadcast %36 : vector<1x32xf32> to vector<16x32xf32>
    %57 = arith.mulf %55, %56 : vector<16x32xf32>
    %58 = vector.broadcast %37 : vector<1x32xf32> to vector<16x32xf32>
    %59 = arith.addf %57, %58 : vector<16x32xf32>
    %c0_28 = arith.constant 0 : index
    %c0_29 = arith.constant 0 : index
    %60 = vector.load %arg11[%c0_28, %c0_29] : memref<33x32xf32, #tpu.memory_space<vmem>>, vector<32x32xf32>
    %c32_30 = arith.constant 32 : index
    %c0_31 = arith.constant 0 : index
    %61 = vector.load %arg11[%c32_30, %c0_31] : memref<33x32xf32, #tpu.memory_space<vmem>>, vector<1x32xf32>
    %cst_32 = arith.constant dense<0.000000e+00> : vector<16x32xf32>
    %62 = tpu.matmul %59, %60, %cst_32 {dimension_numbers = #tpu.dot_dimension_numbers<[1], [0], [0], [1], [0, 0, 1, 1], [], []>} : vector<16x32xf32>, vector<32x32xf32>, vector<16x32xf32> -> vector<16x32xf32>
    %63 = vector.broadcast %61 : vector<1x32xf32> to vector<16x32xf32>
    %64 = arith.addf %62, %63 : vector<16x32xf32>
    %c0_33 = arith.constant 0 : index
    %c0_34 = arith.constant 0 : index
    %65 = vector.load %arg1[%c0_33, %c0_34] : memref<16x32xf32, #tpu.memory_space<vmem>>, vector<16x32xf32>
    %c0_35 = arith.constant 0 : index
    %c0_36 = arith.constant 0 : index
    %66 = vector.load %arg2[%c0_35, %c0_36] : memref<16x32xf32, #tpu.memory_space<vmem>>, vector<16x32xf32>
    %67 = tpu.concatenate %65, %66 in 0 : vector<16x32xf32>, vector<16x32xf32> -> vector<32x32xf32>
    %c0_37 = arith.constant 0 : index
    %c0_38 = arith.constant 0 : index
    %68 = vector.load %arg12[%c0_37, %c0_38] : memref<33x64xf32, #tpu.memory_space<vmem>>, vector<32x64xf32>
    %c32_39 = arith.constant 32 : index
    %c0_40 = arith.constant 0 : index
    %69 = vector.load %arg12[%c32_39, %c0_40] : memref<33x64xf32, #tpu.memory_space<vmem>>, vector<1x64xf32>
    %cst_41 = arith.constant dense<0.000000e+00> : vector<32x64xf32>
    %70 = tpu.matmul %67, %68, %cst_41 {dimension_numbers = #tpu.dot_dimension_numbers<[1], [0], [0], [1], [0, 0, 1, 1], [], []>} : vector<32x32xf32>, vector<32x64xf32>, vector<32x64xf32> -> vector<32x64xf32>
    %71 = vector.broadcast %69 : vector<1x64xf32> to vector<32x64xf32>
    %72 = arith.addf %70, %71 : vector<32x64xf32>
    %73 = vector.extract_strided_slice %72 {offsets = [0, 0], sizes = [16, 32], strides = [1, 1]} : vector<32x64xf32> to vector<16x32xf32>
    %74 = vector.extract_strided_slice %72 {offsets = [16, 32], sizes = [16, 32], strides = [1, 1]} : vector<32x64xf32> to vector<16x32xf32>
    %c0_42 = arith.constant 0 : index
    %c0_43 = arith.constant 0 : index
    %75 = vector.load %arg4[%c0_42, %c0_43] : memref<16x64xf32, #tpu.memory_space<vmem>>, vector<16x64xf32>
    %c0_44 = arith.constant 0 : index
    %c0_45 = arith.constant 0 : index
    %76 = vector.load %arg6[%c0_44, %c0_45] : memref<64x32xf32, #tpu.memory_space<vmem>>, vector<64x32xf32>
    %c0_46 = arith.constant 0 : index
    %c0_47 = arith.constant 0 : index
    %77 = vector.load %arg8[%c0_46, %c0_47] : memref<64x64xf32, #tpu.memory_space<vmem>>, vector<64x64xf32>
    %78 = tpu.concatenate %73, %73, %73, %73 in 0 : vector<16x32xf32>, vector<16x32xf32>, vector<16x32xf32>, vector<16x32xf32> -> vector<64x32xf32>
    %79 = arith.mulf %78, %76 : vector<64x32xf32>
    %80 = tpu.concatenate %74, %74, %74, %74 in 0 : vector<16x32xf32>, vector<16x32xf32>, vector<16x32xf32>, vector<16x32xf32> -> vector<64x32xf32>
    %81 = arith.mulf %80, %76 : vector<64x32xf32>
    %82 = tpu.transpose %79, [1, 0] : vector<64x32xf32> -> vector<32x64xf32>
    %cst_48 = arith.constant dense<0.000000e+00> : vector<16x64xf32>
    %83 = tpu.matmul %64, %82, %cst_48 {dimension_numbers = #tpu.dot_dimension_numbers<[1], [0], [0], [1], [0, 0, 1, 1], [], []>} : vector<16x32xf32>, vector<32x64xf32>, vector<16x64xf32> -> vector<16x64xf32>
    %84 = arith.addf %83, %75 : vector<16x64xf32>
    %cst_49 = arith.constant 0.176776692 : f32
    %85 = vector.broadcast %cst_49 : f32 to vector<16x64xf32>
    %86 = arith.mulf %84, %85 : vector<16x64xf32>
    %cst_50 = arith.constant dense<0xFF800000> : vector<16xf32>
    %87 = vector.multi_reduction <maximumf>, %86, %cst_50 [1] : vector<16x64xf32> to vector<16xf32>
    %88 = vector.shape_cast %87 : vector<16xf32> to vector<16x1xf32>
    %89 = vector.broadcast %88 : vector<16x1xf32> to vector<16x64xf32>
    %90 = arith.subf %86, %89 : vector<16x64xf32>
    %91 = math.exp %90 : vector<16x64xf32>
    %cst_51 = arith.constant dense<0.000000e+00> : vector<16x64xf32>
    %92 = tpu.matmul %91, %77, %cst_51 {dimension_numbers = #tpu.dot_dimension_numbers<[1], [0], [0], [1], [0, 0, 1, 1], [], []>} : vector<16x64xf32>, vector<64x64xf32>, vector<16x64xf32> -> vector<16x64xf32>
    %93 = tpu.reciprocal %92 {approx = true} : vector<16x64xf32> -> vector<16x64xf32>
    %94 = arith.mulf %91, %93 : vector<16x64xf32>
    %cst_52 = arith.constant dense<0.000000e+00> : vector<16x32xf32>
    %95 = tpu.matmul %94, %81, %cst_52 {dimension_numbers = #tpu.dot_dimension_numbers<[1], [0], [0], [1], [0, 0, 1, 1], [], []>} : vector<16x64xf32>, vector<64x32xf32>, vector<16x32xf32> -> vector<16x32xf32>
    %c0_53 = arith.constant 0 : index
    %c0_54 = arith.constant 0 : index
    %96 = vector.load %arg13[%c0_53, %c0_54] : memref<33x32xf32, #tpu.memory_space<vmem>>, vector<32x32xf32>
    %c32_55 = arith.constant 32 : index
    %c0_56 = arith.constant 0 : index
    %97 = vector.load %arg13[%c32_55, %c0_56] : memref<33x32xf32, #tpu.memory_space<vmem>>, vector<1x32xf32>
    %cst_57 = arith.constant dense<0.000000e+00> : vector<16x32xf32>
    %98 = tpu.matmul %95, %96, %cst_57 {dimension_numbers = #tpu.dot_dimension_numbers<[1], [0], [0], [1], [0, 0, 1, 1], [], []>} : vector<16x32xf32>, vector<32x32xf32>, vector<16x32xf32> -> vector<16x32xf32>
    %99 = vector.broadcast %97 : vector<1x32xf32> to vector<16x32xf32>
    %100 = arith.addf %98, %99 : vector<16x32xf32>
    %101 = arith.addf %100, %59 : vector<16x32xf32>
    %c2 = arith.constant 2 : index
    %c0_58 = arith.constant 0 : index
    %102 = vector.load %arg16[%c2, %c0_58] : memref<6x32xf32, #tpu.memory_space<vmem>>, vector<1x32xf32>
    %c3 = arith.constant 3 : index
    %c0_59 = arith.constant 0 : index
    %103 = vector.load %arg16[%c3, %c0_59] : memref<6x32xf32, #tpu.memory_space<vmem>>, vector<1x32xf32>
    %cst_60 = arith.constant dense<0.000000e+00> : vector<16xf32>
    %104 = vector.multi_reduction <add>, %101, %cst_60 [1] : vector<16x32xf32> to vector<16xf32>
    %105 = vector.shape_cast %104 : vector<16xf32> to vector<16x1xf32>
    %cst_61 = arith.constant 3.200000e+01 : f32
    %106 = vector.broadcast %cst_61 : f32 to vector<16x1xf32>
    %107 = arith.divf %105, %106 : vector<16x1xf32>
    %108 = vector.broadcast %107 : vector<16x1xf32> to vector<16x32xf32>
    %109 = arith.subf %101, %108 : vector<16x32xf32>
    %110 = arith.mulf %109, %109 : vector<16x32xf32>
    %cst_62 = arith.constant dense<0.000000e+00> : vector<16xf32>
    %111 = vector.multi_reduction <add>, %110, %cst_62 [1] : vector<16x32xf32> to vector<16xf32>
    %112 = vector.shape_cast %111 : vector<16xf32> to vector<16x1xf32>
    %cst_63 = arith.constant 3.200000e+01 : f32
    %113 = vector.broadcast %cst_63 : f32 to vector<16x1xf32>
    %114 = arith.divf %112, %113 : vector<16x1xf32>
    %115 = vector.broadcast %107 : vector<16x1xf32> to vector<16x32xf32>
    %116 = arith.subf %101, %115 : vector<16x32xf32>
    %cst_64 = arith.constant 9.99999974E-6 : f32
    %117 = vector.broadcast %cst_64 : f32 to vector<16x1xf32>
    %118 = arith.addf %114, %117 : vector<16x1xf32>
    %119 = math.rsqrt %118 : vector<16x1xf32>
    %120 = vector.broadcast %119 : vector<16x1xf32> to vector<16x32xf32>
    %121 = arith.mulf %116, %120 : vector<16x32xf32>
    %122 = vector.broadcast %102 : vector<1x32xf32> to vector<16x32xf32>
    %123 = arith.mulf %121, %122 : vector<16x32xf32>
    %124 = vector.broadcast %103 : vector<1x32xf32> to vector<16x32xf32>
    %125 = arith.addf %123, %124 : vector<16x32xf32>
    %c0_65 = arith.constant 0 : index
    %c0_66 = arith.constant 0 : index
    %126 = vector.load %arg14[%c0_65, %c0_66] : memref<33x64xf32, #tpu.memory_space<vmem>>, vector<32x64xf32>
    %c32_67 = arith.constant 32 : index
    %c0_68 = arith.constant 0 : index
    %127 = vector.load %arg14[%c32_67, %c0_68] : memref<33x64xf32, #tpu.memory_space<vmem>>, vector<1x64xf32>
    %cst_69 = arith.constant dense<0.000000e+00> : vector<16x64xf32>
    %128 = tpu.matmul %125, %126, %cst_69 {dimension_numbers = #tpu.dot_dimension_numbers<[1], [0], [0], [1], [0, 0, 1, 1], [], []>} : vector<16x32xf32>, vector<32x64xf32>, vector<16x64xf32> -> vector<16x64xf32>
    %129 = vector.broadcast %127 : vector<1x64xf32> to vector<16x64xf32>
    %130 = arith.addf %128, %129 : vector<16x64xf32>
    %cst_70 = arith.constant 0.000000e+00 : f32
    %131 = vector.broadcast %cst_70 : f32 to vector<16x64xf32>
    %132 = arith.maximumf %130, %131 : vector<16x64xf32>
    %c0_71 = arith.constant 0 : index
    %c0_72 = arith.constant 0 : index
    %133 = vector.load %arg15[%c0_71, %c0_72] : memref<65x32xf32, #tpu.memory_space<vmem>>, vector<64x32xf32>
    %c64 = arith.constant 64 : index
    %c0_73 = arith.constant 0 : index
    %134 = vector.load %arg15[%c64, %c0_73] : memref<65x32xf32, #tpu.memory_space<vmem>>, vector<1x32xf32>
    %cst_74 = arith.constant dense<0.000000e+00> : vector<16x32xf32>
    %135 = tpu.matmul %132, %133, %cst_74 {dimension_numbers = #tpu.dot_dimension_numbers<[1], [0], [0], [1], [0, 0, 1, 1], [], []>} : vector<16x64xf32>, vector<64x32xf32>, vector<16x32xf32> -> vector<16x32xf32>
    %136 = vector.broadcast %134 : vector<1x32xf32> to vector<16x32xf32>
    %137 = arith.addf %135, %136 : vector<16x32xf32>
    %138 = arith.addf %125, %137 : vector<16x32xf32>
    %c4 = arith.constant 4 : index
    %c0_75 = arith.constant 0 : index
    %139 = vector.load %arg16[%c4, %c0_75] : memref<6x32xf32, #tpu.memory_space<vmem>>, vector<1x32xf32>
    %c5 = arith.constant 5 : index
    %c0_76 = arith.constant 0 : index
    %140 = vector.load %arg16[%c5, %c0_76] : memref<6x32xf32, #tpu.memory_space<vmem>>, vector<1x32xf32>
    %cst_77 = arith.constant dense<0.000000e+00> : vector<16xf32>
    %141 = vector.multi_reduction <add>, %138, %cst_77 [1] : vector<16x32xf32> to vector<16xf32>
    %142 = vector.shape_cast %141 : vector<16xf32> to vector<16x1xf32>
    %cst_78 = arith.constant 3.200000e+01 : f32
    %143 = vector.broadcast %cst_78 : f32 to vector<16x1xf32>
    %144 = arith.divf %142, %143 : vector<16x1xf32>
    %145 = vector.broadcast %144 : vector<16x1xf32> to vector<16x32xf32>
    %146 = arith.subf %138, %145 : vector<16x32xf32>
    %147 = arith.mulf %146, %146 : vector<16x32xf32>
    %cst_79 = arith.constant dense<0.000000e+00> : vector<16xf32>
    %148 = vector.multi_reduction <add>, %147, %cst_79 [1] : vector<16x32xf32> to vector<16xf32>
    %149 = vector.shape_cast %148 : vector<16xf32> to vector<16x1xf32>
    %cst_80 = arith.constant 3.200000e+01 : f32
    %150 = vector.broadcast %cst_80 : f32 to vector<16x1xf32>
    %151 = arith.divf %149, %150 : vector<16x1xf32>
    %152 = vector.broadcast %144 : vector<16x1xf32> to vector<16x32xf32>
    %153 = arith.subf %138, %152 : vector<16x32xf32>
    %cst_81 = arith.constant 9.99999974E-6 : f32
    %154 = vector.broadcast %cst_81 : f32 to vector<16x1xf32>
    %155 = arith.addf %151, %154 : vector<16x1xf32>
    %156 = math.rsqrt %155 : vector<16x1xf32>
    %157 = vector.broadcast %156 : vector<16x1xf32> to vector<16x32xf32>
    %158 = arith.mulf %153, %157 : vector<16x32xf32>
    %159 = vector.broadcast %139 : vector<1x32xf32> to vector<16x32xf32>
    %160 = arith.mulf %158, %159 : vector<16x32xf32>
    %161 = vector.broadcast %140 : vector<1x32xf32> to vector<16x32xf32>
    %162 = arith.addf %160, %161 : vector<16x32xf32>
    %c0_82 = arith.constant 0 : index
    %c0_83 = arith.constant 0 : index
    %163 = vector.load %arg17[%c0_82, %c0_83] : memref<16x32xf32, #tpu.memory_space<vmem>>, vector<16x32xf32>
    tpu.vector_store %arg17[%c0_82, %c0_83], %162 {strides = array<i32>} : memref<16x32xf32, #tpu.memory_space<vmem>>, vector<16x32xf32>,
    return
  }
}

</mosaic_0001>

<bundles_post_ra>
// kernel: tile.14
= control target key start
LH: loop header
LB: loop body
LE: loop exit
PB: predicated region body
PF: predicated region fallthrough
CT: control target
= control target key end

     0   :  { %vm82_vm0 = vcmask 1047556   ;;  %vm84_vm1 = vcmask 130048   ;;  %s195_s9 = smov 48   ;;  %s196_s14 = smov 16   ;;  %vm103_vm2 = vcmask 523648   ;;  %vm124_vm3 = vcmask 392448   ;;  %s289_s0 = inlined_call_operand.vmem [shape: f32[16,4,16], index: 0, kind: input, shape index: {}]   ;;  %s290_s1 = inlined_call_operand.vmem [shape: f32[16,64], index: 1, kind: output, shape index: {}]  }
   0x1   :  { %v180_v0 = vld [vmem:[%s289_s0 + $0x1c] sm:$0xf]  ;;  %v181_v1 = vld [vmem:[%s289_s0 + $0x18] sm:$0xf]  ;;  %v182_v2 = vld [vmem:[%s289_s0 + $0x14] sm:$0xf] }
   0x2   :  { %48 = vst [vmem:[#allocation0 + $0x38] sm:$0xf] %v180_v0  ;;  %53 = vst [vmem:[#allocation0 + $0x30] sm:$0xf] %v181_v1  ;;  %v183_v3 = vld [vmem:[%s289_s0 + $0x10] sm:$0xf] }
   0x3   :  { %58 = vst [vmem:[#allocation0 + $0x28] sm:$0xf] %v182_v2  ;;  %v184_v4 = vld [vmem:[%s289_s0 + $0xc] sm:$0xf]  ;;  %v185_v5 = vld [vmem:[%s289_s0 + $0x8] sm:$0xf] }
   0x4   :  { %63 = vst [vmem:[#allocation0 + $0x20] sm:$0xf] %v183_v3  ;;  %68 = vst [vmem:[#allocation0 + $0x18] sm:$0xf] %v184_v4  ;;  %v186_v6 = vld [vmem:[%s289_s0 + $0x4] sm:$0xf] }
   0x5   :  { %73 = vst [vmem:[#allocation0 + $0x10] sm:$0xf] %v185_v5  ;;  %v78_v7 = vld [vmem:[%s289_s0] sm:$0xf]  ;;  %77 = vst [vmem:[#allocation0 + $0x8] sm:$0xf] %v186_v6 }
   0x6   :  { %79 = vst [vmem:[#allocation0] sm:$0xf] %v78_v7  ;;  %v172_v8 = vld [vmem:[%s289_s0 + $0x3c] sm:$0xf]  ;;  %v173_v9 = vld [vmem:[%s289_s0 + $0x38] sm:$0xf] }
   0x7   :  { %8 = vst [vmem:[#allocation0 + $0x78] sm:$0xf] %v172_v8  ;;  %13 = vst [vmem:[#allocation0 + $0x70] sm:$0xf] %v173_v9  ;;  %v174_v10 = vld [vmem:[%s289_s0 + $0x34] sm:$0xf] }
   0x8   :  { %v175_v11 = vld [vmem:[%s289_s0 + $0x30] sm:$0xf]  ;;  %v176_v12 = vld [vmem:[%s289_s0 + $0x2c] sm:$0xf]  ;;  %18 = vst [vmem:[#allocation0 + $0x68] sm:$0xf] %v174_v10 }
   0x9   :  { %23 = vst [vmem:[#allocation0 + $0x60] sm:$0xf] %v175_v11  ;;  %28 = vst [vmem:[#allocation0 + $0x58] sm:$0xf] %v176_v12  ;;  %v177_v13 = vld [vmem:[%s289_s0 + $0x28] sm:$0xf] }
   0xa   :  { %v178_v14 = vld [vmem:[%s289_s0 + $0x24] sm:$0xf]  ;;  %v179_v15 = vld [vmem:[%s289_s0 + $0x20] sm:$0xf]  ;;  %33 = vst [vmem:[#allocation0 + $0x50] sm:$0xf] %v177_v13 }
   0xb   :  { %38 = vst [vmem:[#allocation0 + $0x48] sm:$0xf] %v178_v14  ;;  %43 = vst [vmem:[#allocation0 + $0x40] sm:$0xf] %v179_v15  ;;  %s194_s0 = smov 32   ;;  %vm145_vm4 = vcmask 261248  }
   0xc   :  { %v119_v16 = vld [vmem:[#allocation0 + $0x2] ss:$8 sm:$0xf0]   ;;  %v98_v17 = vld [vmem:[#allocation0 + $0x3] ss:$8 sm:$0xf0]  }
   0xd   :  { %v117_v18 = vld [vmem:[#allocation0 + $0x2] ss:$8 sm:$0xf]   ;;  %v96_v19 = vld [vmem:[#allocation0 + $0x3] ss:$8 sm:$0xf]  }
   0xe   :  { %v121_v20 = vsel %vm82_vm0, %v119_v16, %v117_v18  ;;  %v100_v21 = vsel %vm82_vm0, %v98_v17, %v96_v19  ;;  %v138_v24 = vld [vmem:[#allocation0 + $0x1] ss:$8 sm:$0xf]   ;;  %v80_v32 = vld [vmem:[#allocation0] ss:$8 sm:$0xf]  }
   0xf   :  { %122 = vrot.lane.b32.xlu1 %v121_v20, %s194_s0  ;;  %101 = vrot.lane.b32.xlu0 %v100_v21, %s195_s9  ;;  %v140_v25 = vld [vmem:[#allocation0 + $0x1] ss:$8 sm:$0xf0]   ;;  %v81_v33 = vld [vmem:[#allocation0] ss:$8 sm:$0xf0]  }
  0x10   :  { %v129_v22 = vld [vmem:[#allocation0 + $0x42] ss:$8 sm:$0xf0]   ;;  %v108_v23 = vld [vmem:[#allocation0 + $0x43] ss:$8 sm:$0xf0]   ;;  %v83_v34 = vsel %vm82_vm0, %v81_v33, %v80_v32  ;;  %v142_v38 = vsel %vm82_vm0, %v140_v25, %v138_v24 }
  0x11   :  { %v150_v31 = vld [vmem:[#allocation0 + $0x41] ss:$8 sm:$0xf0]   ;;  %v89_v36 = vld [vmem:[#allocation0 + $0x40] ss:$8 sm:$0xf0]  }
  0x12   :  { %v127_v26 = vld [vmem:[#allocation0 + $0x42] ss:$8 sm:$0xf]   ;;  %v106_v27 = vld [vmem:[#allocation0 + $0x43] ss:$8 sm:$0xf]  }
  0x13   :  { %v131_v28 = vsel %vm82_vm0, %v129_v22, %v127_v26  ;;  %v110_v29 = vsel %vm82_vm0, %v108_v23, %v106_v27  ;;  %v148_v30 = vld [vmem:[#allocation0 + $0x41] ss:$8 sm:$0xf]   ;;  %v87_v35 = vld [vmem:[#allocation0 + $0x40] ss:$8 sm:$0xf]  }
  0x14   :  { %132 = vrot.lane.b32.xlu1 %v131_v28, %s194_s0  ;;  %111 = vrot.lane.b32.xlu0 %v110_v29, %s195_s9  ;;  %v152_v37 = vsel %vm82_vm0, %v150_v31, %v148_v30  ;;  %85 = vst.msk [vmem:[%s290_s1] sm:$0xff] %vm84_vm1, %v83_v34   ;;  %v91_v39 = vsel %vm82_vm0, %v89_v36, %v87_v35 }
  0x15   :  { %187 = vst.msk [vmem:[%s290_s1 + $0x8] sm:$0xff] %vm84_vm1, %v91_v39  }
  0x18   :  { %153 = vrot.lane.b32.xlu1 %v152_v37, %s196_s14  ;;  %143 = vrot.lane.b32.xlu0 %v142_v38, %s196_s14 }
  0x81   :  { %v123_v40 = vpop.permute.xlu1 %122   ;;  %v102_v41 = vpop.permute.xlu0 %101  }
  0x82   :  { %104 = vst.msk [vmem:[%s290_s1] sm:$0xff] %vm103_vm2, %v102_v41  }
  0x83   :  { %125 = vst.msk [vmem:[%s290_s1] sm:$0xff] %vm124_vm3, %v123_v40  }
  0x86   :  { %v133_v42 = vpop.permute.xlu1 %132   ;;  %v112_v43 = vpop.permute.xlu0 %111  }
  0x87   :  { %188 = vst.msk [vmem:[%s290_s1 + $0x8] sm:$0xff] %vm103_vm2, %v112_v43  }
  0x88   :  { %189 = vst.msk [vmem:[%s290_s1 + $0x8] sm:$0xff] %vm124_vm3, %v133_v42  }
  0x8a   :  { %v154_v44 = vpop.permute.xlu1 %153   ;;  %v144_v45 = vpop.permute.xlu0 %143  }
  0x8b   :  { %190 = vst.msk [vmem:[%s290_s1 + $0x8] sm:$0xff] %vm145_vm4, %v154_v44   ;;  %146 = vst.msk [vmem:[%s290_s1] sm:$0xff] %vm145_vm4, %v144_v45  }

// kernel: eq.47
= control target key start
LH: loop header
LB: loop body
LE: loop exit
PB: predicated region body
PF: predicated region fallthrough
CT: control target
= control target key end

     0   :  { %vm7_vm0 = vcmask 130048   ;;  %s37_s8 = smov 16   ;;  %s38_s9 = smov 32   ;;  %vm13_vm1 = vcmask 523648   ;;  %vm19_vm2 = vcmask 392448   ;;  %vm25_vm3 = vcmask 261248   ;;  %s55_s0 = inlined_call_operand.vmem [shape: s32[4,16], index: 0, kind: input, shape index: {}]   ;;  %s56_s1 = inlined_call_operand.vmem [shape: s32[64], index: 1, kind: output, shape index: {}]  }
   0x1   :  { %v4_v0 = vld [vmem:[%s55_s0] sm:$0xf]  ;;  %s36_s0 = smov 48  }
   0x2   :  { %5 = vst [vmem:[#allocation1] sm:$0xf] %v4_v0 }
   0x9   :  { %v10_v1 = vld [vmem:[#allocation1 + $0x3] sm:$0x1]   ;;  %v22_v2 = vld [vmem:[#allocation1 + $0x1] sm:$0x1]   ;;  %v6_v3 = vld [vmem:[#allocation1] sm:$0x1]  }
   0xa   :  { %11 = vrot.lane.b32.xlu0 %v10_v1, %s36_s0  ;;  %23 = vrot.lane.b32.xlu1 %v22_v2, %s37_s8  ;;  %v16_v4 = vld [vmem:[#allocation1 + $0x2] sm:$0x1]   ;;  %8 = vst.msk [vmem:[#allocation0] sm:$0x1] %vm7_vm0, %v6_v3  }
   0xe   :  { %17 = vrot.lane.b32.xlu0 %v16_v4, %s38_s9 }
  0x7c   :  { %v12_v5 = vpop.permute.xlu0 %11   ;;  %v24_v6 = vpop.permute.xlu1 %23  }
  0x7d   :  { %14 = vst.msk [vmem:[#allocation0] sm:$0x1] %vm13_vm1, %v12_v5  }
  0x80   :  { %v18_v7 = vpop.permute.xlu0 %17  }
  0x81   :  { %20 = vst.msk [vmem:[#allocation0] sm:$0x1] %vm19_vm2, %v18_v7  }
  0x82   :  { %26 = vst.msk [vmem:[#allocation0] sm:$0x1] %vm25_vm3, %v24_v6  }
  0x89   :  { %v30_v8 = vld [vmem:[#allocation0] sm:$0x1] }
  0x8a   :  { %32 = vst [vmem:[%s56_s1] sm:$0x1] %v30_v8 }

// kernel: decoder_block.1
= control target key start
LH: loop header
LB: loop body
LE: loop exit
PB: predicated region body
PF: predicated region fallthrough
CT: control target
= control target key end

     0   :  { %s2926_s0 = inlined_call_operand.vmem [shape: f32[16,32], index: 0, kind: input, shape index: {}]   ;;  %s2927_s1 = inlined_call_operand.vmem [shape: f32[16,32], index: 1, kind: input, shape index: {}]   ;;  %s2928_s2 = inlined_call_operand.vmem [shape: f32[16,32], index: 2, kind: input, shape index: {}]   ;;  %s2929_s3 = inlined_call_operand.vmem [shape: f32[16,64], index: 3, kind: input, shape index: {}]   ;;  %s2930_s4 = inlined_call_operand.vmem [shape: f32[16,64], index: 4, kind: input, shape index: {}]   ;;  %s2931_s5 = inlined_call_operand.vmem [shape: f32[64,32], index: 5, kind: input, shape index: {}, may-alias: {5,6}]   ;;  %s2932_s6 = inlined_call_operand.vmem [shape: f32[64,32], index: 6, kind: input, shape index: {}, may-alias: {5,6}]   ;;  %s2933_s7 = inlined_call_operand.vmem [shape: f32[64,64], index: 7, kind: input, shape index: {}, may-alias: {7,8}]   ;;  %s2934_s8 = inlined_call_operand.vmem [shape: f32[64,64], index: 8, kind: input, shape index: {}, may-alias: {7,8}]   ;;  %s2935_s9 = inlined_call_operand.vmem [shape: f32[33,96], index: 9, kind: input, shape index: {}]   ;;  %s2936_s10 = inlined_call_operand.vmem [shape: f32[33,32], index: 10, kind: input, shape index: {}]   ;;  %s2937_s11 = inlined_call_operand.vmem [shape: f32[33,32], index: 11, kind: input, shape index: {}]   ;;  %s2938_s12 = inlined_call_operand.vmem [shape: f32[33,64], index: 12, kind: input, shape index: {}]   ;;  %s2939_s13 = inlined_call_operand.vmem [shape: f32[33,32], index: 13, kind: input, shape index: {}]   ;;  %s2940_s14 = inlined_call_operand.vmem [shape: f32[33,64], index: 14, kind: input, shape index: {}]   ;;  %s2941_s15 = inlined_call_operand.vmem [shape: f32[65,32], index: 15, kind: input, shape index: {}]   ;;  %s2942_s16 = inlined_call_operand.vmem [shape: f32[6,32], index: 16, kind: input, shape index: {}]   ;;  %s2943_s17 = inlined_call_operand.hbm [shape: f32[16,32], index: 17, kind: output, shape index: {}]  }
   0x1   :  { %2946 = sst [smem:[#allocation5_spill]] %s2926_s0 }
   0x2   :  { %2947 = sst [smem:[#allocation6_spill]] %s2927_s1 }
   0x3   :  { %v59_v0 = vld [vmem:[%s2935_s9] sm:$0xff]  ;;  %v60_v1 = vld [vmem:[%s2935_s9 + $0x8] sm:$0xff]  ;;  %v61_v2 = vld [vmem:[%s2935_s9 + $0x10] sm:$0xff]  ;;  %vm68_vm0 = vcmask 261120   ;;  %s2948_s1 = sld [smem:[#allocation5_spill]]  ;;  %s2329_s24 = smov 32  }
   0x4   :  { %v2035_v3 = vpack.c.bf16 %v60_v1, %v59_v0  ;;  %v62_v4 = vld [vmem:[%s2935_s9 + $0x18] sm:$0xff]  ;;  %v2447_v7 = vld [vmem:[%s2931_s5 + $0x10] sm:$0xff]  ;;  %v2452_v8 = vld [vmem:[%s2931_s5] sm:$0xff] }
   0x5   :  { %v2039_v6 = vpack.c.bf16 %v62_v4, %v61_v2  ;;  %180 = vrot.lane.b32.xlu1 %v2447_v7, %s2329_s24  ;;  %176 = vrot.lane.b32.xlu0 %v2452_v8, %s2329_s24  ;;  %v2461_v9 = vld [vmem:[%s2931_s5 + $0x18] sm:$0xff] }
   0x6   :  { %2036 = vmatprep.subr.bf16.mxu1 %v2035_v3 }
   0x7   :  { %2038 = vmatpush3.bf16.msra.mxu1 %v2035_v3 }
   0x9   :  { %v2440_v5 = vld [vmem:[%s2948_s1] sm:$0xff] }
   0xa   :  { %1841 = vmatprep.mubr.msk.f32.mxu1 %vm68_vm0, %v2440_v5 }
   0xb   :  { %22 = vsyncpa [#allocation3], 0  ;;  %2040 = vmatprep.subr.bf16.mxu1 %v2039_v6  ;;  %v2466_v10 = vld [vmem:[%s2931_s5 + $0x8] sm:$0xff]  ;;  %182 = vrot.lane.b32.xlu1 %v2461_v9, %s2329_s24  ;;  %v2485_v13 = vld [vmem:[%s2931_s5 + $0x20] sm:$0xff]  ;;  %vm363_vm2 = vcmask 523264   ;;  %s2331_s22 = smov 64  }
   0xc   :  { %2042 = vmatpush3.bf16.msra.mxu1 %v2039_v6  ;;  %v2473_v11 = vld [vmem:[%s2948_s1 + $0x8] sm:$0xff]  ;;  %178 = vrot.lane.b32.xlu0 %v2466_v10, %s2329_s24  ;;  %v2496_v14 = vld [vmem:[%s2931_s5 + $0x38] sm:$0xff]  ;;  %v2501_v15 = vld [vmem:[%s2931_s5 + $0x30] sm:$0xff]  ;;  %s2951_s18 = sld [smem:[#allocation6_spill]]  ;;  %s2332_s23 = smov [#allocation2]  }
   0xd   :  { %v2480_v12 = vld [vmem:[%s2931_s5 + $0x28] sm:$0xff]  ;;  %v1668_v22 = vld [vmem:[%s2935_s9 + $0x20] ss:$0 sm:$0xff]  ;;  %s2330_s5 = smov 96   ;;  %vm2530_vm1 = vmpackc.low %vm68_vm0, %vm68_vm0  ;;  %s1657_s25 = sshll.u32 %s2332_s23, 4  ;;  %s1658_s25 = int_to_ptr.vmem [resolvable:$true] %s1657_s25 }
   0xe   :  { %v151_v58 = vld [vmem:[%s2929_s3 + $0x8] sm:$0xff]  ;;  %v150_v59 = vld [vmem:[%s2929_s3] sm:$0xff]  ;;  %s2305_s26 = scalar_lea.vmem %s1658_s25, 256  ;;  %p2310_p1 = scmp.lt.s32.totalorder %s1658_s25, %s1658_s25 }
   0xf   :  { %1842 = vmatmul.mubr.msk.f32.vlgmr.msra.gmra.mrb[0].mxu1 %vm68_vm0, %v2473_v11  ;;  %186 = vrot.lane.b32.xlu1 %v2480_v12, %s2329_s24  ;;  %v160_v4 = vld [vmem:[%s2933_s7] sm:$0xff]  ;;  %v161_v6 = vld [vmem:[%s2933_s7 + $0x8] sm:$0xff]  ;;  %p2306_p0 = scmp.ne.s32.totalorder %s1658_s25, %s2305_s26  ;;  %p2311_p2 = scmp.lt.s32.totalorder %s2305_s26, %s2305_s26 }
  0x10   :  { %184 = vrot.lane.b32.xlu0 %v2485_v13, %s2329_s24  ;;  %v800_v47 = vld [vmem:[%s2928_s2 + $0x8] sm:$0xff] }
  0x11   :  { %p2312_p3 = por %p2311_p2, %p2310_p1 }
  0x13   :  { %190 = vrot.lane.b32.xlu1 %v2496_v14, %s2329_s24  ;;  %p2313_p4 = pnand %p2312_p3, %p2306_p0 }
  0x14   :  { %188 = vrot.lane.b32.xlu0 %v2501_v15, %s2329_s24 }
  0x77   :  { %v181_v16 = vpop.permute.xlu1 %180  ;;  %v177_v17 = vpop.permute.xlu0 %176 }
  0x7d   :  { %v183_v18 = vpop.permute.xlu1 %182 }
  0x7e   :  { %v179_v19 = vpop.permute.xlu0 %178 }
  0x81   :  { %v187_v20 = vpop.permute.xlu1 %186 }
  0x82   :  { %v185_v21 = vpop.permute.xlu0 %184 }
  0x85   :  { %v191_v27 = vpop.permute.xlu1 %190 }
  0x86   :  { %v189_v28 = vpop.permute.xlu0 %188 }
  0xe2   :  { %v1843_v23 = vpop.f32.mrb[0].mxu1 }
  0xe3   :  { %v2510_v24 = vadd.f32 %v1843_v23, %v1668_v22  ;;  %v141_v25 = vpop.f32.mrb[1].mxu1  ;;  %v167_v23 = vld [vmem:[%s2933_s7 + $0x38] sm:$0xff] }
  0xe4   :  { %v2512_v26 = vadd.f32 %v1668_v22, %v141_v25 }
  0xe5   :  { %v203_v29 = vmul.f32 %v183_v18, %v2510_v24  ;;  %v201_v30 = vmul.f32 %v179_v19, %v2510_v24  ;;  %v207_v33 = vmul.f32 %v191_v27, %v2510_v24  ;;  %v205_v34 = vmul.f32 %v187_v20, %v2510_v24  ;;  %v163_v18 = vld [vmem:[%s2933_s7 + $0x18] sm:$0xff]  ;;  %v164_v20 = vld [vmem:[%s2933_s7 + $0x20] sm:$0xff] }
  0xe6   :  { %1860 = vmatprep.mubr.msk.f32.mxu1 %vm68_vm0, %v2512_v26  ;;  %v202_v31 = vmul.f32 %v181_v16, %v2512_v26  ;;  %v200_v32 = vmul.f32 %v177_v17, %v2512_v26  ;;  %v206_v35 = vmul.f32 %v189_v28, %v2512_v26  ;;  %v204_v38 = vmul.f32 %v185_v21, %v2512_v26  ;;  %v162_v17 = vld [vmem:[%s2933_s7 + $0x10] sm:$0xff]  ;;  %v165_v21 = vld [vmem:[%s2933_s7 + $0x28] sm:$0xff] }
  0xe7   :  { %v2067_v16 = vpack.c.bf16 %v161_v6, %v160_v4  ;;  %v2071_v19 = vpack.c.bf16 %v163_v18, %v162_v17  ;;  %v2075_v22 = vpack.c.bf16 %v165_v21, %v164_v20 }
  0xe8   :  { %v2222_v36 = vpack.i.bf16 %v203_v29, %v202_v31  ;;  %v2217_v37 = vpack.i.bf16 %v201_v30, %v200_v32  ;;  %v2232_v39 = vpack.i.bf16 %v207_v33, %v206_v35  ;;  %v2227_v40 = vpack.i.bf16 %v205_v34, %v204_v38 }
  0xe9   :  { %2068 = vmatprep.subr.bf16.mxu0 %v2067_v16 }
  0xea   :  { %2223 = vrot.lane.b32.xlu1 %v2222_v36, %s2330_s5  ;;  %2218 = vrot.lane.b32.xlu0 %v2217_v37, %s2330_s5 }
  0xeb   :  { %2070 = vmatpush3.bf16.msra.mxu0 %v2067_v16 }
  0xec   :  { %2072 = vmatprep.subr.bf16.mxu0 %v2071_v19 }
  0xee   :  { %2233 = vrot.lane.b32.xlu1 %v2232_v39, %s2330_s5  ;;  %2228 = vrot.lane.b32.xlu0 %v2227_v40, %s2330_s5 }
  0xef   :  { %2074 = vmatpush3.bf16.msra.mxu0 %v2071_v19 }
  0xf0   :  { %2076 = vmatprep.subr.bf16.mxu0 %v2075_v22 }
  0xf3   :  { %2078 = vmatpush3.bf16.msra.mxu0 %v2075_v22 }
 0x15c   :  { %v2224_v41 = vpop.permute.xlu1 %2223  ;;  %v2219_v42 = vpop.permute.xlu0 %2218 }
 0x15d   :  { %v2226_v43 = vunpack.i.h.bf16 %v2224_v41  ;;  %v2225_v44 = vunpack.i.l.bf16 %v2224_v41  ;;  %v2221_v45 = vunpack.i.h.bf16 %v2219_v42  ;;  %v2220_v46 = vunpack.i.l.bf16 %v2219_v42 }
 0x15f   :  { %v2043_v48 = vpack.c.bf16 %v2221_v45, %v2220_v46  ;;  %v2049_v49 = vpack.c.bf16 %v2226_v43, %v2225_v44 }
 0x160   :  { %v2229_v50 = vpop.permute.xlu0 %2228  ;;  %v2234_v54 = vpop.permute.xlu1 %2233 }
 0x161   :  { %2045 = vmatprep.subr.msk.bf16.mxu1 %vm2530_vm1, %v2043_v48  ;;  %v2231_v51 = vunpack.i.h.bf16 %v2229_v50  ;;  %v2230_v52 = vunpack.i.l.bf16 %v2229_v50  ;;  %v2236_v55 = vunpack.i.h.bf16 %v2234_v54  ;;  %v2235_v56 = vunpack.i.l.bf16 %v2234_v54  ;;  %v576_v50 = vld [vmem:[%s2936_s10 + $0x10] sm:$0xff] }
 0x162   :  { %2048 = vmatpush3.bf16.xpose.msk.msra.mxu1 %vm2530_vm1, %v2043_v48 }
 0x163   :  { %2051 = vmatprep.subr.msk.bf16.mxu1 %vm2530_vm1, %v2049_v49  ;;  %v2055_v53 = vpack.c.bf16 %v2231_v51, %v2230_v52  ;;  %v2061_v57 = vpack.c.bf16 %v2236_v55, %v2235_v56  ;;  %v577_v51 = vld [vmem:[%s2936_s10 + $0x18] sm:$0xff] }
 0x164   :  { %v2103_v52 = vpack.c.bf16 %v577_v51, %v576_v50  ;;  %v2684_v50 = vld [vmem:[%s2932_s6 + $0x18] sm:$0xff]  ;;  %v2689_v51 = vld [vmem:[%s2932_s6 + $0x28] sm:$0xff] }
 0x16a   :  { %2054 = vmatpush3.bf16.xpose.msk.msra.mxu1 %vm2530_vm1, %v2049_v49  ;;  %v574_v49 = vld [vmem:[%s2936_s10] sm:$0xff] }
 0x16b   :  { %2057 = vmatprep.subr.msk.bf16.mxu1 %vm2530_vm1, %v2055_v53 }
 0x172   :  { %2060 = vmatpush3.bf16.xpose.msk.msra.mxu1 %vm2530_vm1, %v2055_v53 }
 0x173   :  { %2063 = vmatprep.subr.msk.bf16.mxu1 %vm2530_vm1, %v2061_v57 }
 0x17a   :  { %2066 = vmatpush3.bf16.xpose.msk.msra.mxu1 %vm2530_vm1, %v2061_v57 }
 0x181   :  { %1861 = vmatmul.mubr.msk.f32.vlgmr.msra.gmra.mrb[2].mxu1 %vm68_vm0, %v2510_v24 }
 0x254   :  { %v1862_v60 = vpop.f32.mrb[2].mxu1 }
 0x255   :  { %v358_v61 = vadd.f32 %v1862_v60, %v151_v58  ;;  %v352_v62 = vpop.f32.mrb[3].mxu1 }
 0x256   :  { %v353_v63 = vadd.f32 %v352_v62, %v150_v59 }
 0x257   :  { %v362_v0 = vmul.f32 0.17677669, %v358_v61 }
 0x258   :  { %v361_v1 = vmul.f32 0.17677669, %v353_v63 }
 0x259   :  { %v367_v2 = vsel %vm363_vm2, %v362_v0, -inf }
 0x25a   :  { %368 = vmax.xlane.f32.xlu1 %v367_v2  ;;  %v364_v3 = vsel %vm363_vm2, %v361_v1, -inf }
 0x25b   :  { %365 = vmax.xlane.f32.xlu0 %v364_v3 }
 0x26b   :  { %210 = vrot.lane.b32.xlu1 %v2466_v10, %s2331_s22  ;;  %v166_v10 = vld [vmem:[%s2933_s7 + $0x30] sm:$0xff] }
 0x26c   :  { %v2079_v25 = vpack.c.bf16 %v167_v23, %v166_v10  ;;  %v1685_v10 = vld [vmem:[%s2936_s10 + $0x20] ss:$0 sm:$0xff] }
 0x26e   :  { %2080 = vmatprep.subr.bf16.mxu0 %v2079_v25 }
 0x26f   :  { %214 = vrot.lane.b32.xlu1 %v2461_v9, %s2331_s22  ;;  %2082 = vmatpush3.bf16.msra.mxu0 %v2079_v25 }
 0x271   :  { %208 = vrot.lane.b32.xlu0 %v2452_v8, %s2331_s22 }
 0x273   :  { %218 = vrot.lane.b32.xlu1 %v2480_v12, %s2331_s22 }
 0x275   :  { %212 = vrot.lane.b32.xlu0 %v2447_v7, %s2331_s22 }
 0x277   :  { %222 = vrot.lane.b32.xlu1 %v2496_v14, %s2331_s22 }
 0x279   :  { %216 = vrot.lane.b32.xlu0 %v2485_v13, %s2331_s22 }
 0x27d   :  { %220 = vrot.lane.b32.xlu0 %v2501_v15, %s2331_s22 }
 0x2e7   :  { %v369_v8 = vpop.xlane.xlu1 %368 }
 0x2e8   :  { %v371_v9 = vsub.f32 %v362_v0, %v369_v8  ;;  %v366_v27 = vpop.xlane.xlu0 %365 }
 0x2e9   :  { %v370_v28 = vsub.f32 %v361_v1, %v366_v27 }
 0x2ea   :  { %v374_v12 = vmul.f32 1.442695, %v371_v9 }
 0x2eb   :  { %v372_v29 = vmul.f32 1.442695, %v370_v28  ;;  %v211_v30 = vpop.permute.xlu1 %210 }
 0x2ec   :  { %v233_v7 = vmul.f32 %v211_v30, %v2510_v24  ;;  %v209_v31 = vpop.permute.xlu0 %208  ;;  %v801_v30 = vld [vmem:[%s2938_s12] sm:$0xff] }
 0x2ed   :  { %2277 = vpow2.f32 %v372_v29  ;;  %v232_v32 = vmul.f32 %v209_v31, %v2512_v26 }
 0x2ee   :  { %2279 = vpow2.f32 %v374_v12 }
 0x2ef   :  { %v2237_v14 = vpack.i.bf16 %v233_v7, %v232_v32  ;;  %v215_v33 = vpop.permute.xlu1 %214  ;;  %v802_v7 = vld [vmem:[%s2938_s12 + $0x8] sm:$0xff]  ;;  %v797_v32 = vld [vmem:[%s2951_s18] sm:$0xff] }
 0x2f0   :  { %v235_v13 = vmul.f32 %v215_v33, %v2510_v24  ;;  %v213_v34 = vpop.permute.xlu0 %212  ;;  %v2115_v31 = vpack.c.bf16 %v802_v7, %v801_v30  ;;  %v798_v33 = vld [vmem:[%s2951_s18 + $0x8] sm:$0xff] }
 0x2f1   :  { %v234_v15 = vmul.f32 %v213_v34, %v2512_v26  ;;  %2238 = vrot.lane.b32.xlu0 %v2237_v14, %s2331_s22 }
 0x2f3   :  { %v2242_v35 = vpack.i.bf16 %v235_v13, %v234_v15  ;;  %v219_v36 = vpop.permute.xlu1 %218 }
 0x2f4   :  { %v237_v37 = vmul.f32 %v219_v36, %v2510_v24  ;;  %v217_v38 = vpop.permute.xlu0 %216 }
 0x2f5   :  { %v236_v39 = vmul.f32 %v217_v38, %v2512_v26  ;;  %2243 = vrot.lane.b32.xlu1 %v2242_v35, %s2331_s22 }
 0x2f7   :  { %v2278_v40 = vpop.eup %2277  ;;  %v2247_v41 = vpack.i.bf16 %v237_v37, %v236_v39  ;;  %v223_v42 = vpop.permute.xlu1 %222 }
 0x2f8   :  { %v2280_v43 = vpop.eup %2279  ;;  %v239_v44 = vmul.f32 %v223_v42, %v2510_v24  ;;  %1879 = vmatprep.mubr.msk.f32.mxu0 %vm363_vm2, %v2278_v40  ;;  %v221_v45 = vpop.permute.xlu0 %220  ;;  %v575_v24 = vld [vmem:[%s2936_s10 + $0x8] sm:$0xff]  ;;  %v707_v42 = vld [vmem:[%s2937_s11] sm:$0xff] }
 0x2f9   :  { %v238_v46 = vmul.f32 %v221_v45, %v2512_v26  ;;  %1880 = vmatmul.mubr.msk.f32.vlgmr.msra.gmra.mrb[0].mxu0 %vm363_vm2, %v2280_v43  ;;  %2248 = vrot.lane.b32.xlu0 %v2247_v41, %s2331_s22  ;;  %v2099_v26 = vpack.c.bf16 %v575_v24, %v574_v49  ;;  %v709_v45 = vld [vmem:[%s2937_s11 + $0x10] sm:$0xff]  ;;  %v2674_v49 = vld [vmem:[%s2938_s12 + $0x20] ss:$0 sm:$0xff]  ;;  %v2679_v24 = vld [vmem:[%s2932_s6 + $0x8] sm:$0xff] }
 0x2fb   :  { %v2252_v48 = vpack.i.bf16 %v239_v44, %v238_v46  ;;  %2100 = vmatprep.subr.bf16.mxu1 %v2099_v26  ;;  %v710_v46 = vld [vmem:[%s2937_s11 + $0x18] sm:$0xff] }
 0x2fc   :  { %2102 = vmatpush3.bf16.msra.mxu1 %v2099_v26 }
 0x2fd   :  { %2253 = vrot.lane.b32.xlu1 %v2252_v48, %s2331_s22  ;;  %2104 = vmatprep.subr.bf16.mxu1 %v2103_v52  ;;  %v2111_v48 = vpack.c.bf16 %v710_v46, %v709_v45  ;;  %v919_v45 = vld [vmem:[%s2934_s8 + $0x10] sm:$0xff]  ;;  %v920_v46 = vld [vmem:[%s2934_s8 + $0x18] sm:$0xff] }
 0x300   :  { %2106 = vmatpush3.bf16.msra.mxu1 %v2103_v52  ;;  %v2694_v52 = vld [vmem:[%s2932_s6 + $0x38] sm:$0xff] }
 0x301   :  { %2116 = vmatprep.subr.bf16.mxu1 %v2115_v31 }
 0x363   :  { %v2239_v53 = vpop.permute.xlu0 %2238 }
 0x364   :  { %v2241_v54 = vunpack.i.h.bf16 %v2239_v53  ;;  %v2240_v55 = vunpack.i.l.bf16 %v2239_v53  ;;  %v2699_v53 = vld [vmem:[%s2932_s6] sm:$0xff] }
 0x366   :  { %v2083_v56 = vpack.c.bf16 %v2241_v54, %v2240_v55 }
 0x367   :  { %v2244_v57 = vpop.permute.xlu1 %2243 }
 0x368   :  { %v2246_v58 = vunpack.i.h.bf16 %v2244_v57  ;;  %v2245_v59 = vunpack.i.l.bf16 %v2244_v57  ;;  %2084 = vmatprep.subr.bf16.mxu0 %v2083_v56  ;;  %v2710_v57 = vld [vmem:[%s2932_s6 + $0x20] sm:$0xff] }
 0x369   :  { %2086 = vmatpush3.bf16.msra.mxu0 %v2083_v56  ;;  %v2705_v56 = vld [vmem:[%s2932_s6 + $0x10] sm:$0xff] }
 0x36a   :  { %v2087_v60 = vpack.c.bf16 %v2246_v58, %v2245_v59  ;;  %v2715_v58 = vld [vmem:[%s2932_s6 + $0x30] sm:$0xff] }
 0x36b   :  { %v2249_v61 = vpop.permute.xlu0 %2248 }
 0x36c   :  { %v2251_v62 = vunpack.i.h.bf16 %v2249_v61  ;;  %v2250_v63 = vunpack.i.l.bf16 %v2249_v61  ;;  %2088 = vmatprep.subr.bf16.mxu0 %v2087_v60 }
 0x36d   :  { %2090 = vmatpush3.bf16.msra.mxu0 %v2087_v60 }
 0x36e   :  { %v2091_v0 = vpack.c.bf16 %v2251_v62, %v2250_v63 }
 0x36f   :  { %v2254_v1 = vpop.permute.xlu1 %2253 }
 0x370   :  { %v2256_v2 = vunpack.i.h.bf16 %v2254_v1  ;;  %v2255_v3 = vunpack.i.l.bf16 %v2254_v1  ;;  %2092 = vmatprep.subr.bf16.mxu0 %v2091_v0 }
 0x371   :  { %2094 = vmatpush3.bf16.msra.mxu0 %v2091_v0 }
 0x372   :  { %v2095_v4 = vpack.c.bf16 %v2256_v2, %v2255_v3 }
 0x374   :  { %2096 = vmatprep.subr.bf16.mxu0 %v2095_v4 }
 0x375   :  { %2098 = vmatpush3.bf16.msra.mxu0 %v2095_v4 }
 0x3cc   :  { %v1881_v6 = vpop.f32.mrb[0].mxu0 }
 0x3cd   :  { %2281 = vrcp.f32 %v1881_v6  ;;  %v448_v16 = vpop.f32.mrb[1].mxu0 }
 0x3ce   :  { %2283 = vrcp.f32 %v448_v16 }
 0x3d7   :  { %v2282_v17 = vpop.eup %2281 }
 0x3d8   :  { %v2284_v18 = vpop.eup %2283  ;;  %v460_v20 = vmul.f32 %v2282_v17, %v2280_v43  ;;  %v708_v43 = vld [vmem:[%s2937_s11 + $0x8] sm:$0xff] }
 0x3d9   :  { %v459_v19 = vmul.f32 %v2284_v18, %v2278_v40  ;;  %v2107_v44 = vpack.c.bf16 %v708_v43, %v707_v42  ;;  %v917_v42 = vld [vmem:[%s2934_s8] sm:$0xff]  ;;  %v918_v43 = vld [vmem:[%s2934_s8 + $0x8] sm:$0xff] }
 0x3db   :  { %1898 = vmatprep.mubr.msk.f32.mxu0 %vm363_vm2, %v459_v19  ;;  %2108 = vmatprep.subr.bf16.mxu0 %v2107_v44 }
 0x3dc   :  { %1899 = vmatmul.mubr.msk.f32.vlgmr.msra.gmra.mrb[2].mxu0 %vm363_vm2, %v460_v20 }
 0x3dd   :  { %2110 = vmatpush3.bf16.msra.mxu0 %v2107_v44  ;;  %v2147_v44 = vpack.c.bf16 %v918_v43, %v917_v42 }
 0x3de   :  { %2112 = vmatprep.subr.bf16.mxu0 %v2111_v48 }
 0x3e1   :  { %2114 = vmatpush3.bf16.msra.mxu0 %v2111_v48  ;;  %v2151_v48 = vpack.c.bf16 %v920_v46, %v919_v45 }
 0x4af   :  { %v1900_v21 = vpop.f32.mrb[2].mxu0 }
 0x4b0   :  { %v565_v22 = vpop.f32.mrb[3].mxu0 }
 0x4b1   :  { %1909 = vmatprep.mubr.msk.f32.mxu1 %vm68_vm0, %v565_v22 }
 0x4b2   :  { %1910 = vmatmul.mubr.msk.f32.vlgmr.msra.gmra.mrb[4].mxu1 %vm68_vm0, %v1900_v21 }
 0x4b3   :  { %1931 = vmatprep.mubr.msk.f32.mxu1 %vm68_vm0, %v797_v32  ;;  %2118 = vmatpush3.bf16.msra.mxu1 %v2115_v31 }
 0x585   :  { %v1911_v23 = vpop.f32.mrb[4].mxu1 }
 0x586   :  { %v661_v25 = vadd.f32 %v1911_v23, %v1685_v10  ;;  %v655_v8 = vpop.f32.mrb[5].mxu1 }
 0x587   :  { %v656_v9 = vadd.f32 %v1685_v10, %v655_v8 }
 0x588   :  { %v665_v27 = vadd.f32 %v661_v25, %v2473_v11  ;;  %v803_v11 = vld [vmem:[%s2938_s12 + $0x10] sm:$0xff]  ;;  %v1688_v25 = vld [vmem:[%s2942_s16] ss:$0 sm:$0xff] }
 0x589   :  { %v664_v28 = vadd.f32 %v656_v9, %v2440_v5  ;;  %v804_v5 = vld [vmem:[%s2938_s12 + $0x18] sm:$0xff]  ;;  %v1689_v9 = vld [vmem:[%s2942_s16 + $0x1] ss:$0 sm:$0xff] }
 0x58a   :  { %v671_v12 = vsel %vm68_vm0, %v665_v27, 0.0  ;;  %v2119_v14 = vpack.c.bf16 %v804_v5, %v803_v11  ;;  %v1690_v11 = vld [vmem:[%s2937_s11 + $0x20] ss:$0 sm:$0xff] }
 0x58b   :  { %672 = vadd.xlane.f32.xlu1 %v671_v12  ;;  %v668_v29 = vsel %vm68_vm0, %v664_v28, 0.0 }
 0x58c   :  { %669 = vadd.xlane.f32.xlu0 %v668_v29  ;;  %2120 = vmatprep.subr.bf16.mxu1 %v2119_v14 }
 0x58d   :  { %2122 = vmatpush3.bf16.msra.mxu1 %v2119_v14 }
 0x58e   :  { %2148 = vmatprep.subr.bf16.mxu1 %v2147_v44 }
 0x590   :  { %1932 = vmatmul.mubr.msk.f32.vlgmr.msra.gmra.mrb[6].mxu1 %vm68_vm0, %v798_v33  ;;  %v799_v33 = vld [vmem:[%s2928_s2] sm:$0xff] }
 0x591   :  { %1934 = vmatprep.mubr.msk.f32.mxu1 %vm68_vm0, %v799_v33  ;;  %2150 = vmatpush3.bf16.msra.mxu1 %v2147_v44 }
 0x592   :  { %2152 = vmatprep.subr.bf16.mxu1 %v2151_v48 }
 0x594   :  { %1935 = vmatmul.mubr.msk.f32.gmra.mrb[8].mxu1 %vm68_vm0, %v800_v47 }
 0x595   :  { %2154 = vmatpush3.bf16.msra.mxu1 %v2151_v48 }
 0x618   :  { %v673_v13 = vpop.xlane.xlu1 %672 }
 0x619   :  { %v676_v34 = vmul.f32 0.03125, %v673_v13  ;;  %v670_v15 = vpop.xlane.xlu0 %669  ;;  %v908_v13 = vld [vmem:[%s2930_s4 + $0x8] sm:$0xff] }
 0x61a   :  { %v675_v35 = vmul.f32 0.03125, %v670_v15 }
 0x61b   :  { %v678_v36 = vsub.f32 %v665_v27, %v676_v34  ;;  %v907_v34 = vld [vmem:[%s2930_s4] sm:$0xff] }
 0x61c   :  { %v677_v37 = vsub.f32 %v664_v28, %v675_v35 }
 0x61d   :  { %v680_v40 = vmul.f32 %v678_v36, %v678_v36 }
 0x61e   :  { %v679_v38 = vmul.f32 %v677_v37, %v677_v37 }
 0x61f   :  { %v684_v41 = vsel %vm68_vm0, %v680_v40, 0.0 }
 0x620   :  { %v681_v39 = vsel %vm68_vm0, %v679_v38, 0.0 }
 0x621   :  { %682 = vadd.xlane.f32.xlu0 %v681_v39 }
 0x625   :  { %685 = vadd.xlane.f32.xlu0 %v684_v41 }
 0x663   :  { %v1933_v26 = vpop.f32.mrb[6].mxu1 }
 0x664   :  { %v894_v54 = vadd.f32 %v1933_v26, %v2674_v49  ;;  %v888_v55 = vpop.f32.mrb[7].mxu1  ;;  %v921_v26 = vld [vmem:[%s2934_s8 + $0x20] sm:$0xff] }
 0x665   :  { %v889_v59 = vadd.f32 %v2674_v49, %v888_v55  ;;  %v923_v55 = vld [vmem:[%s2934_s8 + $0x30] sm:$0xff] }
 0x666   :  { %v926_v60 = vmul.f32 %v2679_v24, %v894_v54  ;;  %v928_v61 = vmul.f32 %v2684_v50, %v894_v54  ;;  %v930_v62 = vmul.f32 %v2689_v51, %v894_v54  ;;  %v932_v63 = vmul.f32 %v2694_v52, %v894_v54  ;;  %v922_v54 = vld [vmem:[%s2934_s8 + $0x28] sm:$0xff] }
 0x667   :  { %v925_v0 = vmul.f32 %v2699_v53, %v889_v59  ;;  %v927_v1 = vmul.f32 %v2705_v56, %v889_v59  ;;  %v929_v2 = vmul.f32 %v2710_v57, %v889_v59  ;;  %v931_v3 = vmul.f32 %v2715_v58, %v889_v59 }
 0x668   :  { %v2155_v59 = vpack.c.bf16 %v922_v54, %v921_v26 }
 0x669   :  { %v2123_v4 = vpack.c.bf16 %v926_v60, %v925_v0  ;;  %v2129_v6 = vpack.c.bf16 %v928_v61, %v927_v1  ;;  %v2135_v16 = vpack.c.bf16 %v930_v62, %v929_v2  ;;  %v2141_v17 = vpack.c.bf16 %v932_v63, %v931_v3  ;;  %v924_v60 = vld [vmem:[%s2934_s8 + $0x38] sm:$0xff] }
 0x66a   :  { %2156 = vmatprep.subr.bf16.mxu1 %v2155_v59 }
 0x66b   :  { %2125 = vmatprep.subr.msk.bf16.mxu0 %vm2530_vm1, %v2123_v4  ;;  %2158 = vmatpush3.bf16.msra.mxu1 %v2155_v59 }
 0x6ae   :  { %v683_v18 = vpop.xlane.xlu0 %682 }
 0x6af   :  { %v687_v19 = vmul.f32 0.03125, %v683_v18 }
 0x6b1   :  { %v689_v20 = vadd.f32 1e-05, %v687_v19 }
 0x6b2   :  { %v686_v21 = vpop.xlane.xlu0 %685 }
 0x6b3   :  { %2285 = vrsqrt.f32 %v689_v20  ;;  %v688_v22 = vmul.f32 0.03125, %v686_v21 }
 0x6b5   :  { %v690_v10 = vadd.f32 1e-05, %v688_v22 }
 0x6b7   :  { %2287 = vrsqrt.f32 %v690_v10 }
 0x6bd   :  { %v2286_v23 = vpop.eup %2285 }
 0x6be   :  { %v693_v8 = vmul.f32 %v2286_v23, %v677_v37 }
 0x6c0   :  { %v699_v27 = vmul.f32 %v1688_v25, %v693_v8 }
 0x6c1   :  { %v2288_v28 = vpop.eup %2287 }
 0x6c2   :  { %v694_v12 = vmul.f32 %v2288_v28, %v678_v36  ;;  %v2734_v29 = vadd.f32 %v1689_v9, %v699_v27 }
 0x6c4   :  { %v700_v30 = vmul.f32 %v1688_v25, %v694_v12  ;;  %1920 = vmatprep.mubr.msk.f32.mxu0 %vm68_vm0, %v2734_v29 }
 0x6c6   :  { %v2738_v7 = vadd.f32 %v1689_v9, %v700_v30  ;;  %v1290_v30 = vld [vmem:[%s2939_s13] sm:$0xff] }
 0x6c8   :  { %1921 = vmatmul.mubr.msk.f32.vlgmr.msra.gmra.mrb[4].mxu0 %vm68_vm0, %v2738_v7 }
 0x6c9   :  { %2128 = vmatpush3.bf16.xpose.msk.msra.mxu0 %vm2530_vm1, %v2123_v4 }
 0x6ca   :  { %2131 = vmatprep.subr.msk.bf16.mxu0 %vm2530_vm1, %v2129_v6 }
 0x6d1   :  { %2134 = vmatpush3.bf16.xpose.msk.msra.mxu0 %vm2530_vm1, %v2129_v6 }
 0x6d2   :  { %2137 = vmatprep.subr.msk.bf16.mxu0 %vm2530_vm1, %v2135_v16 }
 0x6d9   :  { %2140 = vmatpush3.bf16.xpose.msk.msra.mxu0 %vm2530_vm1, %v2135_v16 }
 0x6da   :  { %2143 = vmatprep.subr.msk.bf16.mxu0 %vm2530_vm1, %v2141_v17 }
 0x6e1   :  { %2146 = vmatpush3.bf16.xpose.msk.msra.mxu0 %vm2530_vm1, %v2141_v17 }
 0x79b   :  { %v1922_v31 = vpop.f32.mrb[4].mxu0 }
 0x79c   :  { %v788_v5 = vpop.f32.mrb[5].mxu0  ;;  %v794_v14 = vadd.f32 %v1922_v31, %v1690_v11  ;;  %v1292_v31 = vld [vmem:[%s2939_s13 + $0x10] sm:$0xff] }
 0x79d   :  { %v789_v32 = vadd.f32 %v1690_v11, %v788_v5  ;;  %v1291_v11 = vld [vmem:[%s2939_s13 + $0x8] sm:$0xff] }
 0x79e   :  { %v2179_v5 = vpack.c.bf16 %v1291_v11, %v1290_v30 }
 0x79f   :  { %1953 = vmatprep.mubr.msk.f32.mxu0 %vm68_vm0, %v789_v32  ;;  %v1293_v32 = vld [vmem:[%s2939_s13 + $0x18] sm:$0xff] }
 0x7a0   :  { %1954 = vmatmul.mubr.msk.f32.vlgmr.msra.gmra.mrb[6].mxu0 %vm68_vm0, %v794_v14  ;;  %v2183_v14 = vpack.c.bf16 %v1293_v32, %v1292_v31  ;;  %2180 = vmatprep.subr.bf16.mxu0 %v2179_v5 }
 0x7a1   :  { %2182 = vmatpush3.bf16.msra.mxu0 %v2179_v5 }
 0x7a2   :  { %2184 = vmatprep.subr.bf16.mxu0 %v2183_v14 }
 0x7a5   :  { %2186 = vmatpush3.bf16.msra.mxu0 %v2183_v14 }
 0x873   :  { %v1955_v15 = vpop.f32.mrb[6].mxu0 }
 0x874   :  { %v1075_v35 = vadd.f32 %v1955_v15, %v908_v13  ;;  %v1069_v36 = vpop.f32.mrb[7].mxu0 }
 0x875   :  { %v1070_v37 = vadd.f32 %v1069_v36, %v907_v34 }
 0x876   :  { %v1079_v38 = vmul.f32 0.17677669, %v1075_v35 }
 0x877   :  { %v1078_v39 = vmul.f32 0.17677669, %v1070_v37 }
 0x878   :  { %v1083_v40 = vsel %vm363_vm2, %v1079_v38, -inf }
 0x879   :  { %1084 = vmax.xlane.f32.xlu0 %v1083_v40  ;;  %v1080_v41 = vsel %vm363_vm2, %v1078_v39, -inf }
 0x87a   :  { %1081 = vmax.xlane.f32.xlu1 %v1080_v41 }
 0x88b   :  { %941 = vrot.lane.b32.xlu1 %v2699_v53, %s2329_s24  ;;  %v2159_v53 = vpack.c.bf16 %v924_v60, %v923_v55 }
 0x88d   :  { %2160 = vmatprep.subr.bf16.mxu1 %v2159_v53 }
 0x88e   :  { %2162 = vmatpush3.bf16.msra.mxu1 %v2159_v53 }
 0x88f   :  { %943 = vrot.lane.b32.xlu0 %v2679_v24, %s2329_s24  ;;  %945 = vrot.lane.b32.xlu1 %v2705_v56, %s2329_s24  ;;  %v1936_v24 = vpop.f32.mrb[8].mxu1 }
 0x890   :  { %v898_v56 = vpop.f32.mrb[9].mxu1 }
 0x893   :  { %947 = vrot.lane.b32.xlu1 %v2684_v50, %s2329_s24  ;;  %949 = vrot.lane.b32.xlu0 %v2710_v57, %s2329_s24  ;;  %v904_v50 = vadd.f32 %v1936_v24, %v2674_v49  ;;  %v899_v57 = vadd.f32 %v2674_v49, %v898_v56  ;;  %v1712_v24 = vld [vmem:[%s2939_s13 + $0x20] ss:$0 sm:$0xff] }
 0x897   :  { %951 = vrot.lane.b32.xlu1 %v2689_v51, %s2329_s24  ;;  %953 = vrot.lane.b32.xlu0 %v2715_v58, %s2329_s24 }
 0x89b   :  { %955 = vrot.lane.b32.xlu1 %v2694_v52, %s2329_s24 }
 0x906   :  { %v1085_v61 = vpop.xlane.xlu0 %1084 }
 0x907   :  { %v1087_v62 = vsub.f32 %v1079_v38, %v1085_v61  ;;  %v1082_v63 = vpop.xlane.xlu1 %1081 }
 0x908   :  { %v1086_v0 = vsub.f32 %v1078_v39, %v1082_v63 }
 0x909   :  { %v1090_v1 = vmul.f32 1.442695, %v1087_v62 }
 0x90a   :  { %v1088_v2 = vmul.f32 1.442695, %v1086_v0  ;;  %v944_v3 = vpop.permute.xlu0 %943 }
 0x90b   :  { %v942_v51 = vpop.permute.xlu1 %941  ;;  %v966_v4 = vmul.f32 %v944_v3, %v904_v50 }
 0x90c   :  { %2289 = vpow2.f32 %v1088_v2  ;;  %v965_v58 = vmul.f32 %v942_v51, %v899_v57 }
 0x90d   :  { %2291 = vpow2.f32 %v1090_v1 }
 0x90e   :  { %v2257_v6 = vpack.i.bf16 %v966_v4, %v965_v58  ;;  %v950_v16 = vpop.permute.xlu0 %949 }
 0x90f   :  { %v946_v52 = vpop.permute.xlu1 %945  ;;  %v969_v22 = vmul.f32 %v950_v16, %v899_v57 }
 0x910   :  { %2258 = vrot.lane.b32.xlu0 %v2257_v6, %s2330_s5  ;;  %v967_v17 = vmul.f32 %v946_v52, %v899_v57 }
 0x912   :  { %v954_v23 = vpop.permute.xlu0 %953 }
 0x913   :  { %v948_v18 = vpop.permute.xlu1 %947  ;;  %v971_v9 = vmul.f32 %v954_v23, %v899_v57  ;;  %v1516_v23 = vld [vmem:[%s2941_s15 + $0x10] sm:$0xff] }
 0x914   :  { %v968_v19 = vmul.f32 %v948_v18, %v904_v50  ;;  %v1423_v18 = vld [vmem:[%s2940_s14 + $0x8] sm:$0xff] }
 0x916   :  { %v2290_v20 = vpop.eup %2289  ;;  %v2262_v21 = vpack.i.bf16 %v968_v19, %v967_v17 }
 0x917   :  { %v2292_v49 = vpop.eup %2291  ;;  %1972 = vmatprep.mubr.msk.f32.mxu1 %vm363_vm2, %v2290_v20  ;;  %v952_v10 = vpop.permute.xlu1 %951 }
 0x918   :  { %1973 = vmatmul.mubr.msk.f32.vlgmr.msra.gmra.mrb[10].mxu1 %vm363_vm2, %v2292_v49  ;;  %v970_v25 = vmul.f32 %v952_v10, %v904_v50  ;;  %2263 = vrot.lane.b32.xlu1 %v2262_v21, %s2330_s5  ;;  %v1425_v21 = vld [vmem:[%s2940_s14 + $0x18] sm:$0xff]  ;;  %v1515_v10 = vld [vmem:[%s2941_s15 + $0x8] sm:$0xff] }
 0x91a   :  { %v2267_v8 = vpack.i.bf16 %v970_v25, %v969_v22 }
 0x91b   :  { %v956_v27 = vpop.permute.xlu1 %955 }
 0x91c   :  { %v972_v28 = vmul.f32 %v956_v27, %v904_v50  ;;  %2268 = vrot.lane.b32.xlu0 %v2267_v8, %s2330_s5  ;;  %v1517_v8 = vld [vmem:[%s2941_s15 + $0x18] sm:$0xff]  ;;  %v1518_v27 = vld [vmem:[%s2941_s15 + $0x20] sm:$0xff] }
 0x91e   :  { %v2272_v12 = vpack.i.bf16 %v972_v28, %v971_v9  ;;  %v2199_v9 = vpack.c.bf16 %v1517_v8, %v1516_v23  ;;  %v1519_v28 = vld [vmem:[%s2941_s15 + $0x28] sm:$0xff] }
 0x920   :  { %2273 = vrot.lane.b32.xlu1 %v2272_v12, %s2330_s5  ;;  %v2203_v12 = vpack.c.bf16 %v1519_v28, %v1518_v27 }
 0x982   :  { %v2259_v33 = vpop.permute.xlu0 %2258 }
 0x983   :  { %v2261_v47 = vunpack.i.h.bf16 %v2259_v33  ;;  %v2260_v13 = vunpack.i.l.bf16 %v2259_v33 }
 0x985   :  { %v2163_v34 = vpack.c.bf16 %v2261_v47, %v2260_v13  ;;  %v1715_v47 = vld [vmem:[%s2942_s16 + $0x2] ss:$0 sm:$0xff] }
 0x987   :  { %2164 = vmatprep.subr.bf16.mxu1 %v2163_v34 }
 0x988   :  { %2166 = vmatpush3.bf16.msra.mxu1 %v2163_v34  ;;  %v1716_v34 = vld [vmem:[%s2942_s16 + $0x3] ss:$0 sm:$0xff] }
 0x98a   :  { %v2264_v15 = vpop.permute.xlu1 %2263 }
 0x98b   :  { %v2266_v35 = vunpack.i.h.bf16 %v2264_v15  ;;  %v2265_v36 = vunpack.i.l.bf16 %v2264_v15 }
 0x98d   :  { %v2167_v37 = vpack.c.bf16 %v2266_v35, %v2265_v36 }
 0x98e   :  { %v2269_v38 = vpop.permute.xlu0 %2268 }
 0x98f   :  { %v2271_v39 = vunpack.i.h.bf16 %v2269_v38  ;;  %v2270_v40 = vunpack.i.l.bf16 %v2269_v38  ;;  %2168 = vmatprep.subr.bf16.mxu1 %v2167_v37 }
 0x990   :  { %2170 = vmatpush3.bf16.msra.mxu1 %v2167_v37 }
 0x991   :  { %v2171_v41 = vpack.c.bf16 %v2271_v39, %v2270_v40  ;;  %v1520_v40 = vld [vmem:[%s2941_s15 + $0x30] sm:$0xff] }
 0x992   :  { %v2274_v42 = vpop.permute.xlu1 %2273 }
 0x993   :  { %v2276_v43 = vunpack.i.h.bf16 %v2274_v42  ;;  %v2275_v44 = vunpack.i.l.bf16 %v2274_v42  ;;  %2172 = vmatprep.subr.bf16.mxu1 %v2171_v41 }
 0x994   :  { %2174 = vmatpush3.bf16.msra.mxu1 %v2171_v41  ;;  %v1521_v41 = vld [vmem:[%s2941_s15 + $0x38] sm:$0xff] }
 0x995   :  { %v2175_v45 = vpack.c.bf16 %v2276_v43, %v2275_v44  ;;  %v2207_v42 = vpack.c.bf16 %v1521_v41, %v1520_v40  ;;  %v1717_v43 = vld [vmem:[%s2940_s14 + $0x20] ss:$0 sm:$0xff] }
 0x997   :  { %2176 = vmatprep.subr.bf16.mxu1 %v2175_v45 }
 0x998   :  { %2178 = vmatpush3.bf16.msra.mxu1 %v2175_v45 }
 0x9eb   :  { %v1974_v46 = vpop.f32.mrb[10].mxu1 }
 0x9ec   :  { %2293 = vrcp.f32 %v1974_v46  ;;  %v1164_v48 = vpop.f32.mrb[11].mxu1 }
 0x9ed   :  { %2295 = vrcp.f32 %v1164_v48 }
 0x9f6   :  { %v2294_v26 = vpop.eup %2293 }
 0x9f7   :  { %v2296_v54 = vpop.eup %2295  ;;  %v1176_v59 = vmul.f32 %v2294_v26, %v2292_v49  ;;  %v1514_v49 = vld [vmem:[%s2941_s15] sm:$0xff] }
 0x9f8   :  { %v1175_v55 = vmul.f32 %v2296_v54, %v2290_v20  ;;  %v1424_v20 = vld [vmem:[%s2940_s14 + $0x10] sm:$0xff]  ;;  %v2195_v25 = vpack.c.bf16 %v1515_v10, %v1514_v49  ;;  %v1724_v10 = vld [vmem:[%s2942_s16 + $0x5] ss:$0 sm:$0xff] }
 0x9f9   :  { %v2191_v22 = vpack.c.bf16 %v1425_v21, %v1424_v20  ;;  %v1723_v20 = vld [vmem:[%s2942_s16 + $0x4] ss:$0 sm:$0xff] }
 0x9fa   :  { %1991 = vmatprep.mubr.msk.f32.mxu1 %vm363_vm2, %v1175_v55  ;;  %2196 = vmatprep.subr.bf16.mxu0 %v2195_v25  ;;  %v1720_v55 = vld [vmem:[%s2941_s15 + $0x40] ss:$0 sm:$0xff] }
 0x9fb   :  { %1992 = vmatmul.mubr.msk.f32.vlgmr.msra.gmra.mrb[12].mxu1 %vm363_vm2, %v1176_v59 }
 0xace   :  { %v1993_v60 = vpop.f32.mrb[12].mxu1 }
 0xacf   :  { %v1281_v53 = vpop.f32.mrb[13].mxu1 }
 0xad0   :  { %2002 = vmatprep.mubr.msk.f32.mxu0 %vm68_vm0, %v1281_v53 }
 0xad1   :  { %2003 = vmatmul.mubr.msk.f32.vlgmr.msra.gmra.mrb[8].mxu0 %vm68_vm0, %v1993_v60 }
 0xad2   :  { %2198 = vmatpush3.bf16.msra.mxu0 %v2195_v25 }
 0xad3   :  { %2200 = vmatprep.subr.bf16.mxu0 %v2199_v9 }
 0xad6   :  { %2202 = vmatpush3.bf16.msra.mxu0 %v2199_v9 }
 0xad7   :  { %2204 = vmatprep.subr.bf16.mxu0 %v2203_v12 }
 0xada   :  { %2206 = vmatpush3.bf16.msra.mxu0 %v2203_v12 }
 0xadb   :  { %2208 = vmatprep.subr.bf16.mxu0 %v2207_v42 }
 0xade   :  { %2210 = vmatpush3.bf16.msra.mxu0 %v2207_v42 }
 0xba4   :  { %v2004_v56 = vpop.f32.mrb[8].mxu0 }
 0xba5   :  { %v1377_v61 = vadd.f32 %v2004_v56, %v1712_v24  ;;  %v1371_v62 = vpop.f32.mrb[9].mxu0 }
 0xba6   :  { %v1372_v63 = vadd.f32 %v1712_v24, %v1371_v62 }
 0xba7   :  { %v1381_v50 = vadd.f32 %v1377_v61, %v2738_v7 }
 0xba8   :  { %v1380_v0 = vadd.f32 %v1372_v63, %v2734_v29  ;;  %v1422_v29 = vld [vmem:[%s2940_s14] sm:$0xff] }
 0xba9   :  { %v1387_v57 = vsel %vm68_vm0, %v1381_v50, 0.0  ;;  %v2187_v19 = vpack.c.bf16 %v1423_v18, %v1422_v29 }
 0xbaa   :  { %1388 = vadd.xlane.f32.xlu1 %v1387_v57  ;;  %v1384_v1 = vsel %vm68_vm0, %v1380_v0, 0.0 }
 0xbab   :  { %1385 = vadd.xlane.f32.xlu0 %v1384_v1  ;;  %2188 = vmatprep.subr.bf16.mxu1 %v2187_v19 }
 0xbac   :  { %2190 = vmatpush3.bf16.msra.mxu1 %v2187_v19 }
 0xbad   :  { %2192 = vmatprep.subr.bf16.mxu1 %v2191_v22 }
 0xbb0   :  { %2194 = vmatpush3.bf16.msra.mxu1 %v2191_v22 }
 0xc37   :  { %v1389_v2 = vpop.xlane.xlu1 %1388 }
 0xc38   :  { %v1391_v3 = vmul.f32 0.03125, %v1389_v2  ;;  %v1386_v51 = vpop.xlane.xlu0 %1385 }
 0xc39   :  { %v1390_v4 = vmul.f32 0.03125, %v1386_v51 }
 0xc3a   :  { %v1393_v58 = vsub.f32 %v1381_v50, %v1391_v3 }
 0xc3b   :  { %v1392_v6 = vsub.f32 %v1380_v0, %v1390_v4 }
 0xc3c   :  { %v1395_v17 = vmul.f32 %v1393_v58, %v1393_v58 }
 0xc3d   :  { %v1394_v52 = vmul.f32 %v1392_v6, %v1392_v6 }
 0xc3e   :  { %v1399_v7 = vsel %vm68_vm0, %v1395_v17, 0.0 }
 0xc3f   :  { %v1396_v16 = vsel %vm68_vm0, %v1394_v52, 0.0 }
 0xc40   :  { %1397 = vadd.xlane.f32.xlu0 %v1396_v16 }
 0xc44   :  { %1400 = vadd.xlane.f32.xlu0 %v1399_v7 }
 0xccd   :  { %v1398_v30 = vpop.xlane.xlu0 %1397 }
 0xcce   :  { %v1402_v11 = vmul.f32 0.03125, %v1398_v30 }
 0xcd0   :  { %v1404_v31 = vadd.f32 1e-05, %v1402_v11 }
 0xcd1   :  { %v1401_v5 = vpop.xlane.xlu0 %1400 }
 0xcd2   :  { %2297 = vrsqrt.f32 %v1404_v31  ;;  %v1403_v32 = vmul.f32 0.03125, %v1401_v5 }
 0xcd4   :  { %v1405_v14 = vadd.f32 1e-05, %v1403_v32 }
 0xcd6   :  { %2299 = vrsqrt.f32 %v1405_v14 }
 0xcdc   :  { %v2298_v33 = vpop.eup %2297 }
 0xcdd   :  { %v1408_v13 = vmul.f32 %v2298_v33, %v1392_v6 }
 0xcdf   :  { %v1414_v15 = vmul.f32 %v1715_v47, %v1408_v13 }
 0xce0   :  { %v2300_v35 = vpop.eup %2299 }
 0xce1   :  { %v1409_v36 = vmul.f32 %v2300_v35, %v1393_v58  ;;  %v1420_v37 = vadd.f32 %v1716_v34, %v1414_v15 }
 0xce3   :  { %v1415_v38 = vmul.f32 %v1715_v47, %v1409_v36  ;;  %2013 = vmatprep.mubr.msk.f32.mxu1 %vm68_vm0, %v1420_v37 }
 0xce5   :  { %v1421_v39 = vadd.f32 %v1716_v34, %v1415_v38 }
 0xce7   :  { %2014 = vmatmul.mubr.msk.f32.vlgmr.msra.gmra.mrb[14].mxu1 %vm68_vm0, %v1421_v39 }
 0xdba   :  { %v2015_v44 = vpop.f32.mrb[14].mxu1 }
 0xdbb   :  { %v1509_v45 = vadd.f32 %v2015_v44, %v1717_v43  ;;  %v1503_v46 = vpop.f32.mrb[15].mxu1 }
 0xdbc   :  { %v1504_v48 = vadd.f32 %v1717_v43, %v1503_v46 }
 0xdbd   :  { %v1513_v54 = vmax.f32 %v1509_v45, 0.0 }
 0xdbe   :  { %v1512_v26 = vmax.f32 %v1504_v48, 0.0 }
 0xdc0   :  { %2032 = vmatprep.mubr.msk.f32.mxu0 %vm363_vm2, %v1512_v26 }
 0xdc1   :  { %2033 = vmatmul.mubr.msk.f32.vlgmr.msra.gmra.mrb[10].mxu0 %vm363_vm2, %v1513_v54 }
 0xe94   :  { %v2034_v59 = vpop.f32.mrb[10].mxu0 }
 0xe95   :  { %v1605_v60 = vadd.f32 %v2034_v59, %v1720_v55  ;;  %v1599_v53 = vpop.f32.mrb[11].mxu0 }
 0xe96   :  { %v1600_v24 = vadd.f32 %v1720_v55, %v1599_v53 }
 0xe97   :  { %v1609_v56 = vadd.f32 %v1605_v60, %v1421_v39 }
 0xe98   :  { %v1608_v61 = vadd.f32 %v1600_v24, %v1420_v37 }
 0xe99   :  { %v1615_v62 = vsel %vm68_vm0, %v1609_v56, 0.0 }
 0xe9a   :  { %1616 = vadd.xlane.f32.xlu0 %v1615_v62  ;;  %v1612_v63 = vsel %vm68_vm0, %v1608_v61, 0.0 }
 0xe9b   :  { %1613 = vadd.xlane.f32.xlu1 %v1612_v63 }
 0xf27   :  { %v1617_v50 = vpop.xlane.xlu0 %1616 }
 0xf28   :  { %v1619_v0 = vmul.f32 0.03125, %v1617_v50  ;;  %v1614_v57 = vpop.xlane.xlu1 %1613 }
 0xf29   :  { %v1618_v1 = vmul.f32 0.03125, %v1614_v57 }
 0xf2a   :  { %v1621_v2 = vsub.f32 %v1609_v56, %v1619_v0 }
 0xf2b   :  { %v1620_v3 = vsub.f32 %v1608_v61, %v1618_v1 }
 0xf2c   :  { %v1623_v51 = vmul.f32 %v1621_v2, %v1621_v2 }
 0xf2d   :  { %v1622_v4 = vmul.f32 %v1620_v3, %v1620_v3 }
 0xf2e   :  { %v1627_v58 = vsel %vm68_vm0, %v1623_v51, 0.0 }
 0xf2f   :  { %1628 = vadd.xlane.f32.xlu0 %v1627_v58  ;;  %v1624_v6 = vsel %vm68_vm0, %v1622_v4, 0.0 }
 0xf30   :  { %1625 = vadd.xlane.f32.xlu1 %v1624_v6 }
 0xfbc   :  { %v1629_v52 = vpop.xlane.xlu0 %1628 }
 0xfbd   :  { %v1631_v16 = vmul.f32 0.03125, %v1629_v52  ;;  %v1626_v17 = vpop.xlane.xlu1 %1625 }
 0xfbe   :  { %v1630_v7 = vmul.f32 0.03125, %v1626_v17 }
 0xfbf   :  { %v1633_v29 = vadd.f32 1e-05, %v1631_v16 }
 0xfc0   :  { %v1632_v18 = vadd.f32 1e-05, %v1630_v7 }
 0xfc1   :  { %2301 = vrsqrt.f32 %v1633_v29 }
 0xfc2   :  { %2303 = vrsqrt.f32 %v1632_v18 }
 0xfcb   :  { %v2302_v19 = vpop.eup %2301 }
 0xfcc   :  { %v2304_v21 = vpop.eup %2303  ;;  %v1637_v22 = vmul.f32 %v2302_v19, %v1621_v2 }
 0xfcd   :  { %v1636_v49 = vmul.f32 %v2304_v21, %v1620_v3 }
 0xfce   :  { %v1643_v23 = vmul.f32 %v1723_v20, %v1637_v22 }
 0xfcf   :  { %v1642_v25 = vmul.f32 %v1723_v20, %v1636_v49 }
 0xfd0   :  { %v1649_v8 = vadd.f32 %v1724_v10, %v1643_v23 }
 0xfd1   :  { %v1648_v9 = vadd.f32 %v1724_v10, %v1642_v25 }
 0xfd2   :  { %1651 = vst.msk [vmem:[#allocation2 + $0x8] sm:$0xff] %vm68_vm0, %v1649_v8 }
 0xfd3   :  { %1650 = vst.msk [vmem:[#allocation2] sm:$0xff] %vm68_vm0, %v1648_v9 }
 0xfd4   :  { %2316 = shalt.err (!%p2313_p4)
}
 0xfd5   :  { %s2317_s9 = scalar_lea.hbm %s2943_s17, 256 }
 0xfd6   :  { %p2318_p5 = scmp.ne.s32.totalorder %s2943_s17, %s2317_s9  ;;  %p2321_p6 = scmp.lt.u32.totalorder %s2317_s9, %s2943_s17 }
 0xfd8   :  { %p2323_p7 = pnand %p2321_p6, %p2318_p5 }
 0xfda   :  { %2326 = shalt.err (!%p2323_p7)
}
 0xfdb   :  { %s2333_s0 = smov 128   ;;  %s2334_s8 = smov 8  }
 0xfdc   :  { %1663 = dma.vmem_to_hbm [thread:$0]  %s1658_s25, 256, %s2943_s17, [#allocation3], %s2333_s0, %s2333_s0, %s2334_s8  }
 0xfdd   :  { %2327 = dma.done.wait [#allocation3], 256  }
 0xfde   :  { %2328 = vsyncadd [#allocation3], 4294967040 }
 0xfdf   :  { %1667 = vsyncpa [#allocation3], 1 }

</bundles_post_ra>
